<compile_context>
chip_gen: v7x
topology: tpu7x:2x2x1
jax: 0.10.0
libtpu: 0.0.40
codegen_flags: <defaults>
</compile_context>

<pallas_src>
import functools
import math

import jax
import jax.numpy as jnp
from jax.experimental import pallas as pl
from jax.experimental.pallas import tpu as pltpu

# --- small synthetic BERT config (shapes consistent with a BERT encoder) ---
VOCAB = 100
TYPE_VOCAB = 2
MAX_POS = 32
HIDDEN = 32
N_HEADS = 4
HEAD_DIM = HIDDEN // N_HEADS
INTERMEDIATE = 64
N_LAYERS = 2
LN_EPS = 1e-12
N_CLASS = 4  # BERTBackBone(n_class=...) only sets num_labels in the HF config; unused by base forward


def _gelu(x):
    # TODO(synk): HF BERT default hidden_act='gelu' is the exact erf-based GELU; erf has no
    # guaranteed Mosaic lowering, so the tanh approximation is used here (drift ~1e-3 rel).
    c = math.sqrt(2.0 / math.pi)
    return 0.5 * x * (1.0 + jnp.tanh(c * (x + 0.044715 * x * x * x)))


def _layernorm(x, g, b, eps):
    mean = jnp.mean(x, axis=-1, keepdims=True)
    var = jnp.mean(jnp.square(x - mean), axis=-1, keepdims=True)
    return (x - mean) * jax.lax.rsqrt(var + eps) * g + b


# ---------------- fused encoder-stack Pallas kernel ----------------

def _bert_encoder_kernel(
    # inputs
    x_emb_ref, mask_ref, emb_g_ref, emb_b_ref,
    wqkv_ref, bqkv_ref, wo_ref, bo_ref, ln1g_ref, ln1b_ref,
    w1_ref, b1_ref, w2_ref, b2_ref, ln2g_ref, ln2b_ref,
    wp_ref, bp_ref,
    # outputs
    emb_out_ref, hidden_ref, pooled_ref,
    # scratch
    h_carry,
    *, n_heads, batch, seq, eps, scale):
    layer = pl.program_id(0)
    rows = batch * seq
    hidden = h_carry.shape[-1]
    d_head = hidden // n_heads

    # ---- layer 0: embedding LayerNorm -> initialize the resident hidden state ----
    @pl.when(layer == 0)
    def _():
        h0 = _layernorm(x_emb_ref[...], emb_g_ref[...], emb_b_ref[...], eps)
        h_carry[...] = h0
        emb_out_ref[...] = h0          # hidden_states[0]

    h = h_carry[...]                   # [rows, hidden] f32 (VMEM-resident carry)
    hb = h.astype(jnp.bfloat16)        # bf16 operands for the MXU, f32 accumulation

    # ---- fused QKV projection: one full-width MXU dot [rows, H] x [H, 3H] ----
    qkv = jnp.dot(hb, wqkv_ref[0], preferred_element_type=jnp.float32) + bqkv_ref[0]

    def head(t, hd):
        # static lane slice of q (t=0) / k (t=1) / v (t=2) for head hd -> [batch, seq, d_head]
        off = t * hidden + hd * d_head
        return qkv[:, off:off + d_head].reshape(batch, seq, d_head)

    # ---- scores for all heads stacked on the leading axis: single softmax pass ----
    s = jnp.concatenate(
        [jnp.einsum('bqd,bkd->bqk', head(0, hd), head(1, hd),
                    preferred_element_type=jnp.float32) for hd in range(n_heads)],
        axis=0)                                            # [n_heads*batch, seq, seq]
    # mask is pre-tiled host-side to [n_heads*batch, 1, seq]; one broadcast add per layer
    s = s * scale + mask_ref[...]
    s = s - jnp.max(s, axis=-1, keepdims=True)
    p = jnp.exp(s)
    p = p * pl.reciprocal(jnp.sum(p, axis=-1, keepdims=True), approx=True)

    # ---- per-head contexts concatenated on lanes -> ONE output-projection dot ----
    ctx = jnp.concatenate(
        [jnp.einsum('bqk,bkd->bqd', p[hd * batch:(hd + 1) * batch], head(2, hd),
                    preferred_element_type=jnp.float32) for hd in range(n_heads)],
        axis=-1)                                           # [batch, seq, hidden]
    ctx2 = ctx.reshape(rows, hidden).astype(jnp.bfloat16)
    attn = jnp.dot(ctx2, wo_ref[0], preferred_element_type=jnp.float32) + bo_ref[0]

    h1 = _layernorm(h + attn, ln1g_ref[0], ln1b_ref[0], eps)      # residual + LN fused epilogue

    # ---- feed-forward (GELU) + residual LN ----
    ff = jnp.dot(h1.astype(jnp.bfloat16), w1_ref[0],
                 preferred_element_type=jnp.float32) + b1_ref[0]
    ff = _gelu(ff)
    ff2 = jnp.dot(ff.astype(jnp.bfloat16), w2_ref[0],
                  preferred_element_type=jnp.float32) + b2_ref[0]
    h2 = _layernorm(h1 + ff2, ln2g_ref[0], ln2b_ref[0], eps)

    h_carry[...] = h2
    hidden_ref[0] = h2                 # per-layer hidden state (output_hidden_states=True)

    # ---- last layer: fused pooler  tanh([CLS] @ Wp + bp) ----
    @pl.when(layer == pl.num_programs(0) - 1)
    def _():
        # [CLS] rows (row b*seq) gathered by cheap static slices; no iota / one-hot matmul
        cls = jnp.concatenate([h2[b * seq:b * seq + 1, :] for b in range(batch)], axis=0)
        pooled = jnp.dot(cls.astype(jnp.bfloat16), wp_ref[...],
                         preferred_element_type=jnp.float32) + bp_ref[...]
        pooled_ref[...] = jnp.tanh(pooled)


def _encoder_call(x_emb, add_mask, packed, batch, seq):
    rows = batch * seq
    n_layers = packed["wqkv"].shape[0]
    kernel = functools.partial(_bert_encoder_kernel, n_heads=N_HEADS,
                               batch=batch, seq=seq, eps=LN_EPS,
                               scale=1.0 / math.sqrt(HEAD_DIM))

    def rep(shape):        # full-array block, constant (resident) across layer steps
        return pl.BlockSpec(tuple(shape), lambda l, _n=len(shape): (0,) * _n)

    def per_layer(shape):  # leading dim indexed by the layer grid axis (pipelined weight DMA)
        return pl.BlockSpec((1,) + tuple(shape[1:]),
                            lambda l, _n=len(shape): (l,) + (0,) * (_n - 1))

    in_specs = [
        rep((rows, HIDDEN)),                       # x_emb (word+pos+type, pre-LN)
        rep((N_HEADS * batch, 1, seq)),            # additive attention mask, tiled over heads
        rep((1, HIDDEN)), rep((1, HIDDEN)),        # embedding LN gamma/beta
        per_layer(packed["wqkv"].shape), per_layer(packed["bqkv"].shape),
        per_layer(packed["wo"].shape), per_layer(packed["bo"].shape),
        per_layer(packed["ln1_g"].shape), per_layer(packed["ln1_b"].shape),
        per_layer(packed["w1"].shape), per_layer(packed["b1"].shape),
        per_layer(packed["w2"].shape), per_layer(packed["b2"].shape),
        per_layer(packed["ln2_g"].shape), per_layer(packed["ln2_b"].shape),
        rep((HIDDEN, HIDDEN)),                     # pooler weight
        rep((1, HIDDEN)),                          # pooler bias
    ]
    out_shape = (
        jax.ShapeDtypeStruct((rows, HIDDEN), jnp.float32),            # embedding hidden state
        jax.ShapeDtypeStruct((n_layers, rows, HIDDEN), jnp.float32),  # per-layer hidden states
        jax.ShapeDtypeStruct((batch, HIDDEN), jnp.float32),           # pooled [CLS]
    )
    out_specs = (
        rep((rows, HIDDEN)),
        pl.BlockSpec((1, rows, HIDDEN), lambda l: (l, 0, 0)),
        rep((batch, HIDDEN)),
    )
    return pl.pallas_call(
        kernel,
        out_shape=out_shape,
        grid=(n_layers,),
        in_specs=in_specs,
        out_specs=out_specs,
        scratch_shapes=[pltpu.VMEM((rows, HIDDEN), jnp.float32)],     # hidden-state carry
        compiler_params=pltpu.CompilerParams(
            dimension_semantics=("arbitrary",)),  # layer axis is sequential (carried state)
    )(x_emb, add_mask, packed["emb_g"], packed["emb_b"],
      packed["wqkv"], packed["bqkv"], packed["wo"], packed["bo"],
      packed["ln1_g"], packed["ln1_b"], packed["w1"], packed["b1"],
      packed["w2"], packed["b2"], packed["ln2_g"], packed["ln2_b"],
      packed["wp"], packed["bp"])


# ---------------- parameter init (deterministic, synthetic) + one-time pack ----------------

def init_params(key):
    def normal(k, shape):
        return 0.02 * jax.random.normal(k, shape, dtype=jnp.float32)

    keys = iter(jax.random.split(key, 8 + 10 * N_LAYERS))
    params = {
        "embeddings": {
            "word": normal(next(keys), (VOCAB, HIDDEN)),
            "pos": normal(next(keys), (MAX_POS, HIDDEN)),
            "type": normal(next(keys), (TYPE_VOCAB, HIDDEN)),
            "ln_g": jnp.ones((HIDDEN,), jnp.float32),
            "ln_b": jnp.zeros((HIDDEN,), jnp.float32),
        },
        "layers": [],
        "pooler": {"w": normal(next(keys), (HIDDEN, HIDDEN)),
                   "b": jnp.zeros((HIDDEN,), jnp.float32)},
    }
    for _ in range(N_LAYERS):
        params["layers"].append({
            "wq": normal(next(keys), (HIDDEN, HIDDEN)), "bq": jnp.zeros((HIDDEN,), jnp.float32),
            "wk": normal(next(keys), (HIDDEN, HIDDEN)), "bk": jnp.zeros((HIDDEN,), jnp.float32),
            "wv": normal(next(keys), (HIDDEN, HIDDEN)), "bv": jnp.zeros((HIDDEN,), jnp.float32),
            "wo": normal(next(keys), (HIDDEN, HIDDEN)), "bo": jnp.zeros((HIDDEN,), jnp.float32),
            "ln1_g": jnp.ones((HIDDEN,), jnp.float32), "ln1_b": jnp.zeros((HIDDEN,), jnp.float32),
            "w1": normal(next(keys), (HIDDEN, INTERMEDIATE)), "b1": jnp.zeros((INTERMEDIATE,), jnp.float32),
            "w2": normal(next(keys), (INTERMEDIATE, HIDDEN)), "b2": jnp.zeros((HIDDEN,), jnp.float32),
            "ln2_g": jnp.ones((HIDDEN,), jnp.float32), "ln2_b": jnp.zeros((HIDDEN,), jnp.float32),
        })
    return params


def pack_params(params):
    """One-time host-side repack for the fused kernel: fused [H, 3H] QKV weight,
    unsplit output projection, bf16 MXU weights, layer-stacked arrays,
    2-D biases / LN params (no per-call reshapes).  Attention scale is applied
    in-kernel in f32 (not folded into bf16 weights)."""
    lyrs = params["layers"]
    stack = lambda f: jnp.stack([f(l) for l in lyrs])
    return {
        "word": params["embeddings"]["word"],
        "pos": params["embeddings"]["pos"],
        "type": params["embeddings"]["type"],
        "emb_g": params["embeddings"]["ln_g"].reshape(1, HIDDEN),
        "emb_b": params["embeddings"]["ln_b"].reshape(1, HIDDEN),
        # fused QKV: columns [ wq | wk | wv ], each block's columns grouped by head
        "wqkv": stack(lambda l: jnp.concatenate([l["wq"], l["wk"], l["wv"]], axis=1)
                      ).astype(jnp.bfloat16),
        "bqkv": stack(lambda l: jnp.concatenate([l["bq"], l["bk"], l["bv"]]
                                                ).reshape(1, 3 * HIDDEN)),
        "wo": stack(lambda l: l["wo"]).astype(jnp.bfloat16),
        "bo": stack(lambda l: l["bo"].reshape(1, HIDDEN)),
        "ln1_g": stack(lambda l: l["ln1_g"].reshape(1, HIDDEN)),
        "ln1_b": stack(lambda l: l["ln1_b"].reshape(1, HIDDEN)),
        "w1": stack(lambda l: l["w1"]).astype(jnp.bfloat16),
        "b1": stack(lambda l: l["b1"].reshape(1, INTERMEDIATE)),
        "w2": stack(lambda l: l["w2"]).astype(jnp.bfloat16),
        "b2": stack(lambda l: l["b2"].reshape(1, HIDDEN)),
        "ln2_g": stack(lambda l: l["ln2_g"].reshape(1, HIDDEN)),
        "ln2_b": stack(lambda l: l["ln2_b"].reshape(1, HIDDEN)),
        "wp": params["pooler"]["w"].astype(jnp.bfloat16),
        "bp": params["pooler"]["b"].reshape(1, HIDDEN),
    }


# ---------------- BERT backbone forward (eval mode, dropout = identity) ----------------

@jax.jit
def bert_backbone_forward(packed, input_ids, attention_mask, token_type_ids):
    B, S = input_ids.shape
    # embedding-table gathers stay in plain JAX glue
    word = jnp.take(packed["word"], input_ids, axis=0)
    pos = jnp.take(packed["pos"], jnp.arange(S), axis=0)[None, :, :]
    tok = jnp.take(packed["type"], token_type_ids, axis=0)
    x_emb = (word + pos + tok).reshape(B * S, HIDDEN)

    # HF-style extended additive attention mask: (1 - mask) * -10000 (scores stay f32),
    # pre-tiled over heads so the kernel adds it once to the head-stacked score tensor.
    add_mask = ((1.0 - attention_mask.astype(jnp.float32)) * -10000.0).reshape(B, 1, S)
    add_mask = jnp.tile(add_mask, (N_HEADS, 1, 1))   # index h*B + b  ->  batch b

    emb_h, layer_h, pooled = _encoder_call(x_emb, add_mask, packed, B, S)

    hidden_states = (emb_h.reshape(B, S, HIDDEN),) + tuple(
        layer_h[i].reshape(B, S, HIDDEN) for i in range(N_LAYERS))
    last_hidden = hidden_states[-1]
    # (last_hidden_state, pooler_output, hidden_states)  -- output_hidden_states=True
    return last_hidden, pooled, hidden_states


if __name__ == "__main__":
    key = jax.random.PRNGKey(0)
    pkey, ikey = jax.random.split(key)
    params = init_params(pkey)
    packed = pack_params(params)

    B, S = 2, 8
    input_ids = jax.random.randint(ikey, (B, S), 0, VOCAB, dtype=jnp.int32)
    attention_mask = jnp.array([[1, 1, 1, 1, 1, 1, 1, 1],
                                [1, 1, 1, 1, 1, 0, 0, 0]], dtype=jnp.int32)
    token_type_ids = jnp.zeros((B, S), dtype=jnp.int32)

    last_hidden, pooled, all_hidden = bert_backbone_forward(
        packed, input_ids, attention_mask, token_type_ids)
    jax.block_until_ready((last_hidden, pooled, all_hidden))

    assert last_hidden.shape == (B, S, HIDDEN)
    assert pooled.shape == (B, HIDDEN)
    assert len(all_hidden) == N_LAYERS + 1
    assert all(h.shape == (B, S, HIDDEN) for h in all_hidden)
    assert bool(jnp.all(jnp.isfinite(last_hidden)))
    assert bool(jnp.all(jnp.isfinite(pooled)))
    print("KERNEL_OK")
</pallas_src>

<mosaic_0001>
module attributes {stable_mosaic.version = 11 : i64} {
  func.func @_bert_encoder_kernel(%arg0: i32, %arg1: memref<16x32xf32, #tpu.memory_space<vmem>>, %arg2: memref<8x1x8xf32, #tpu.memory_space<vmem>>, %arg3: memref<1x32xf32, #tpu.memory_space<vmem>>, %arg4: memref<1x32xf32, #tpu.memory_space<vmem>>, %arg5: memref<1x32x96xbf16, #tpu.memory_space<vmem>>, %arg6: memref<1x1x96xf32, #tpu.memory_space<vmem>>, %arg7: memref<1x32x32xbf16, #tpu.memory_space<vmem>>, %arg8: memref<1x1x32xf32, #tpu.memory_space<vmem>>, %arg9: memref<1x1x32xf32, #tpu.memory_space<vmem>>, %arg10: memref<1x1x32xf32, #tpu.memory_space<vmem>>, %arg11: memref<1x32x64xbf16, #tpu.memory_space<vmem>>, %arg12: memref<1x1x64xf32, #tpu.memory_space<vmem>>, %arg13: memref<1x64x32xbf16, #tpu.memory_space<vmem>>, %arg14: memref<1x1x32xf32, #tpu.memory_space<vmem>>, %arg15: memref<1x1x32xf32, #tpu.memory_space<vmem>>, %arg16: memref<1x1x32xf32, #tpu.memory_space<vmem>>, %arg17: memref<32x32xbf16, #tpu.memory_space<vmem>>, %arg18: memref<1x32xf32, #tpu.memory_space<vmem>>, %arg19: memref<16x32xf32, #tpu.memory_space<vmem>>, %arg20: memref<1x16x32xf32, #tpu.memory_space<vmem>>, %arg21: memref<2x32xf32, #tpu.memory_space<vmem>>, %arg22: memref<16x32xf32, #tpu.memory_space<vmem>>) attributes {dimension_semantics = [#tpu.dimension_semantics<arbitrary>], iteration_bounds = array<i64: 2>, scalar_prefetch = 0 : i64, scratch_operands = 1 : i64, tpu.core_type = #tpu.core_type<tc>, window_params = [{pipeline_mode = #tpu.pipeline_mode<synchronous>, transform_indices = @transform_0, window_bounds = array<i64: 16, 32>}, {pipeline_mode = #tpu.pipeline_mode<synchronous>, transform_indices = @transform_1, window_bounds = array<i64: 8, 1, 8>}, {pipeline_mode = #tpu.pipeline_mode<synchronous>, transform_indices = @transform_2, window_bounds = array<i64: 1, 32>}, {pipeline_mode = #tpu.pipeline_mode<synchronous>, transform_indices = @transform_3, window_bounds = array<i64: 1, 32>}, {transform_indices = @transform_4, window_bounds = array<i64: 1, 32, 96>}, {transform_indices = @transform_5, window_bounds = array<i64: 1, 1, 96>}, {transform_indices = @transform_6, window_bounds = array<i64: 1, 32, 32>}, {transform_indices = @transform_7, window_bounds = array<i64: 1, 1, 32>}, {transform_indices = @transform_8, window_bounds = array<i64: 1, 1, 32>}, {transform_indices = @transform_9, window_bounds = array<i64: 1, 1, 32>}, {transform_indices = @transform_10, window_bounds = array<i64: 1, 32, 64>}, {transform_indices = @transform_11, window_bounds = array<i64: 1, 1, 64>}, {transform_indices = @transform_12, window_bounds = array<i64: 1, 64, 32>}, {transform_indices = @transform_13, window_bounds = array<i64: 1, 1, 32>}, {transform_indices = @transform_14, window_bounds = array<i64: 1, 1, 32>}, {transform_indices = @transform_15, window_bounds = array<i64: 1, 1, 32>}, {pipeline_mode = #tpu.pipeline_mode<synchronous>, transform_indices = @transform_16, window_bounds = array<i64: 32, 32>}, {pipeline_mode = #tpu.pipeline_mode<synchronous>, transform_indices = @transform_17, window_bounds = array<i64: 1, 32>}, {pipeline_mode = #tpu.pipeline_mode<synchronous>, transform_indices = @transform_18, window_bounds = array<i64: 16, 32>}, {transform_indices = @transform_19, window_bounds = array<i64: 1, 16, 32>}, {pipeline_mode = #tpu.pipeline_mode<synchronous>, transform_indices = @transform_20, window_bounds = array<i64: 2, 32>}]} {
    %c0_i32 = arith.constant 0 : i32
    %0 = arith.cmpi eq, %arg0, %c0_i32 : i32
    %1 = arith.extui %0 : i1 to i32
    %c0_i32_0 = arith.constant 0 : i32
    %2 = arith.cmpi ne, %1, %c0_i32_0 : i32
    scf.if %2 {
      %c0_75 = arith.constant 0 : index
      %c0_76 = arith.constant 0 : index
      %164 = vector.load %arg1[%c0_75, %c0_76] : memref<16x32xf32, #tpu.memory_space<vmem>>, vector<16x32xf32>
      %c0_77 = arith.constant 0 : index
      %c0_78 = arith.constant 0 : index
      %165 = vector.load %arg3[%c0_77, %c0_78] : memref<1x32xf32, #tpu.memory_space<vmem>>, vector<1x32xf32>
      %c0_79 = arith.constant 0 : index
      %c0_80 = arith.constant 0 : index
      %166 = vector.load %arg4[%c0_79, %c0_80] : memref<1x32xf32, #tpu.memory_space<vmem>>, vector<1x32xf32>
      %cst_81 = arith.constant dense<0.000000e+00> : vector<16xf32>
      %167 = vector.multi_reduction <add>, %164, %cst_81 [1] : vector<16x32xf32> to vector<16xf32>
      %168 = vector.shape_cast %167 : vector<16xf32> to vector<16x1xf32>
      %cst_82 = arith.constant 3.200000e+01 : f32
      %169 = vector.broadcast %cst_82 : f32 to vector<16x1xf32>
      %170 = arith.divf %168, %169 : vector<16x1xf32>
      %171 = vector.broadcast %170 : vector<16x1xf32> to vector<16x32xf32>
      %172 = arith.subf %164, %171 : vector<16x32xf32>
      %173 = arith.mulf %172, %172 : vector<16x32xf32>
      %cst_83 = arith.constant dense<0.000000e+00> : vector<16xf32>
      %174 = vector.multi_reduction <add>, %173, %cst_83 [1] : vector<16x32xf32> to vector<16xf32>
      %175 = vector.shape_cast %174 : vector<16xf32> to vector<16x1xf32>
      %cst_84 = arith.constant 3.200000e+01 : f32
      %176 = vector.broadcast %cst_84 : f32 to vector<16x1xf32>
      %177 = arith.divf %175, %176 : vector<16x1xf32>
      %178 = vector.broadcast %170 : vector<16x1xf32> to vector<16x32xf32>
      %179 = arith.subf %164, %178 : vector<16x32xf32>
      %cst_85 = arith.constant 9.99999996E-13 : f32
      %180 = vector.broadcast %cst_85 : f32 to vector<16x1xf32>
      %181 = arith.addf %177, %180 : vector<16x1xf32>
      %182 = math.rsqrt %181 : vector<16x1xf32>
      %183 = vector.broadcast %182 : vector<16x1xf32> to vector<16x32xf32>
      %184 = arith.mulf %179, %183 : vector<16x32xf32>
      %185 = vector.broadcast %165 : vector<1x32xf32> to vector<16x32xf32>
      %186 = arith.mulf %184, %185 : vector<16x32xf32>
      %187 = vector.broadcast %166 : vector<1x32xf32> to vector<16x32xf32>
      %188 = arith.addf %186, %187 : vector<16x32xf32>
      %c0_86 = arith.constant 0 : index
      %c0_87 = arith.constant 0 : index
      %189 = vector.load %arg22[%c0_86, %c0_87] : memref<16x32xf32, #tpu.memory_space<vmem>>, vector<16x32xf32>
      tpu.vector_store %arg22[%c0_86, %c0_87], %188 {strides = array<i32>} : memref<16x32xf32, #tpu.memory_space<vmem>>, vector<16x32xf32>,
      %c0_88 = arith.constant 0 : index
      %c0_89 = arith.constant 0 : index
      %190 = vector.load %arg19[%c0_88, %c0_89] : memref<16x32xf32, #tpu.memory_space<vmem>>, vector<16x32xf32>
      tpu.vector_store %arg19[%c0_88, %c0_89], %188 {strides = array<i32>} : memref<16x32xf32, #tpu.memory_space<vmem>>, vector<16x32xf32>,
    } else {
    }
    %c0 = arith.constant 0 : index
    %c0_1 = arith.constant 0 : index
    %3 = vector.load %arg22[%c0, %c0_1] : memref<16x32xf32, #tpu.memory_space<vmem>>, vector<16x32xf32>
    %4 = arith.truncf %3 : vector<16x32xf32> to vector<16x32xbf16>
    %c0_2 = arith.constant 0 : index
    %c0_3 = arith.constant 0 : index
    %c0_4 = arith.constant 0 : index
    %5 = vector.load %arg5[%c0_2, %c0_3, %c0_4] : memref<1x32x96xbf16, #tpu.memory_space<vmem>>, vector<1x32x96xbf16>
    %6 = vector.shape_cast %5 : vector<1x32x96xbf16> to vector<32x96xbf16>
    %cst = arith.constant dense<0.000000e+00> : vector<16x96xf32>
    %7 = tpu.matmul %4, %6, %cst {dimension_numbers = #tpu.dot_dimension_numbers<[1], [0], [0], [1], [0, 0, 1, 1], [], []>} : vector<16x32xbf16>, vector<32x96xbf16>, vector<16x96xf32> -> vector<16x96xf32>
    %c0_5 = arith.constant 0 : index
    %c0_6 = arith.constant 0 : index
    %c0_7 = arith.constant 0 : index
    %8 = vector.load %arg6[%c0_5, %c0_6, %c0_7] : memref<1x1x96xf32, #tpu.memory_space<vmem>>, vector<1x1x96xf32>
    %9 = vector.shape_cast %8 : vector<1x1x96xf32> to vector<1x96xf32>
    %10 = vector.broadcast %9 : vector<1x96xf32> to vector<16x96xf32>
    %11 = arith.addf %7, %10 : vector<16x96xf32>
    %12 = vector.extract_strided_slice %11 {offsets = [0, 0], sizes = [16, 8], strides = [1, 1]} : vector<16x96xf32> to vector<16x8xf32>
    %13 = vector.shape_cast %12 : vector<16x8xf32> to vector<2x8x8xf32>
    %14 = vector.extract_strided_slice %11 {offsets = [0, 32], sizes = [16, 8], strides = [1, 1]} : vector<16x96xf32> to vector<16x8xf32>
    %15 = vector.shape_cast %14 : vector<16x8xf32> to vector<2x8x8xf32>
    "tpu.trace_start"() <{level = 10 : i32, message = "bqd,bkd->bqk"}> : () -> ()
    %cst_8 = arith.constant dense<0.000000e+00> : vector<2x8x8xf32>
    %16 = tpu.matmul %13, %15, %cst_8 {dimension_numbers = #tpu.dot_dimension_numbers<[2], [2], [1], [1], [0, 0, 0, 1, 1, 1], [0], [0]>} : vector<2x8x8xf32>, vector<2x8x8xf32>, vector<2x8x8xf32> -> vector<2x8x8xf32>
    "tpu.trace_stop"() : () -> ()
    %17 = vector.extract_strided_slice %11 {offsets = [0, 8], sizes = [16, 8], strides = [1, 1]} : vector<16x96xf32> to vector<16x8xf32>
    %18 = vector.shape_cast %17 : vector<16x8xf32> to vector<2x8x8xf32>
    %19 = vector.extract_strided_slice %11 {offsets = [0, 40], sizes = [16, 8], strides = [1, 1]} : vector<16x96xf32> to vector<16x8xf32>
    %20 = vector.shape_cast %19 : vector<16x8xf32> to vector<2x8x8xf32>
    "tpu.trace_start"() <{level = 10 : i32, message = "bqd,bkd->bqk"}> : () -> ()
    %cst_9 = arith.constant dense<0.000000e+00> : vector<2x8x8xf32>
    %21 = tpu.matmul %18, %20, %cst_9 {dimension_numbers = #tpu.dot_dimension_numbers<[2], [2], [1], [1], [0, 0, 0, 1, 1, 1], [0], [0]>} : vector<2x8x8xf32>, vector<2x8x8xf32>, vector<2x8x8xf32> -> vector<2x8x8xf32>
    "tpu.trace_stop"() : () -> ()
    %22 = vector.extract_strided_slice %11 {offsets = [0, 16], sizes = [16, 8], strides = [1, 1]} : vector<16x96xf32> to vector<16x8xf32>
    %23 = vector.shape_cast %22 : vector<16x8xf32> to vector<2x8x8xf32>
    %24 = vector.extract_strided_slice %11 {offsets = [0, 48], sizes = [16, 8], strides = [1, 1]} : vector<16x96xf32> to vector<16x8xf32>
    %25 = vector.shape_cast %24 : vector<16x8xf32> to vector<2x8x8xf32>
    "tpu.trace_start"() <{level = 10 : i32, message = "bqd,bkd->bqk"}> : () -> ()
    %cst_10 = arith.constant dense<0.000000e+00> : vector<2x8x8xf32>
    %26 = tpu.matmul %23, %25, %cst_10 {dimension_numbers = #tpu.dot_dimension_numbers<[2], [2], [1], [1], [0, 0, 0, 1, 1, 1], [0], [0]>} : vector<2x8x8xf32>, vector<2x8x8xf32>, vector<2x8x8xf32> -> vector<2x8x8xf32>
    "tpu.trace_stop"() : () -> ()
    %27 = vector.extract_strided_slice %11 {offsets = [0, 24], sizes = [16, 8], strides = [1, 1]} : vector<16x96xf32> to vector<16x8xf32>
    %28 = vector.shape_cast %27 : vector<16x8xf32> to vector<2x8x8xf32>
    %29 = vector.extract_strided_slice %11 {offsets = [0, 56], sizes = [16, 8], strides = [1, 1]} : vector<16x96xf32> to vector<16x8xf32>
    %30 = vector.shape_cast %29 : vector<16x8xf32> to vector<2x8x8xf32>
    "tpu.trace_start"() <{level = 10 : i32, message = "bqd,bkd->bqk"}> : () -> ()
    %cst_11 = arith.constant dense<0.000000e+00> : vector<2x8x8xf32>
    %31 = tpu.matmul %28, %30, %cst_11 {dimension_numbers = #tpu.dot_dimension_numbers<[2], [2], [1], [1], [0, 0, 0, 1, 1, 1], [0], [0]>} : vector<2x8x8xf32>, vector<2x8x8xf32>, vector<2x8x8xf32> -> vector<2x8x8xf32>
    "tpu.trace_stop"() : () -> ()
    %32 = tpu.concatenate %16, %21, %26, %31 in 0 : vector<2x8x8xf32>, vector<2x8x8xf32>, vector<2x8x8xf32>, vector<2x8x8xf32> -> vector<8x8x8xf32>
    %cst_12 = arith.constant 0.353553385 : f32
    %33 = vector.broadcast %cst_12 : f32 to vector<8x8x8xf32>
    %34 = arith.mulf %32, %33 : vector<8x8x8xf32>
    %c0_13 = arith.constant 0 : index
    %c0_14 = arith.constant 0 : index
    %c0_15 = arith.constant 0 : index
    %35 = vector.load %arg2[%c0_13, %c0_14, %c0_15] : memref<8x1x8xf32, #tpu.memory_space<vmem>>, vector<8x1x8xf32>
    %36 = vector.broadcast %35 : vector<8x1x8xf32> to vector<8x8x8xf32>
    %37 = arith.addf %34, %36 : vector<8x8x8xf32>
    %cst_16 = arith.constant dense<0xFF800000> : vector<8x8xf32>
    %38 = vector.multi_reduction <maximumf>, %37, %cst_16 [2] : vector<8x8x8xf32> to vector<8x8xf32>
    %39 = vector.shape_cast %38 : vector<8x8xf32> to vector<8x8x1xf32>
    %40 = vector.broadcast %39 : vector<8x8x1xf32> to vector<8x8x8xf32>
    %41 = arith.subf %37, %40 : vector<8x8x8xf32>
    %42 = math.exp %41 : vector<8x8x8xf32>
    %cst_17 = arith.constant dense<0.000000e+00> : vector<8x8xf32>
    %43 = vector.multi_reduction <add>, %42, %cst_17 [2] : vector<8x8x8xf32> to vector<8x8xf32>
    %44 = vector.shape_cast %43 : vector<8x8xf32> to vector<8x8x1xf32>
    %45 = tpu.reciprocal %44 {approx = true} : vector<8x8x1xf32> -> vector<8x8x1xf32>
    %46 = vector.broadcast %45 : vector<8x8x1xf32> to vector<8x8x8xf32>
    %47 = arith.mulf %42, %46 : vector<8x8x8xf32>
    %48 = vector.extract_strided_slice %47 {offsets = [0, 0, 0], sizes = [2, 8, 8], strides = [1, 1, 1]} : vector<8x8x8xf32> to vector<2x8x8xf32>
    %49 = vector.extract_strided_slice %11 {offsets = [0, 64], sizes = [16, 8], strides = [1, 1]} : vector<16x96xf32> to vector<16x8xf32>
    %50 = vector.shape_cast %49 : vector<16x8xf32> to vector<2x8x8xf32>
    "tpu.trace_start"() <{level = 10 : i32, message = "bqk,bkd->bqd"}> : () -> ()
    %cst_18 = arith.constant dense<0.000000e+00> : vector<2x8x8xf32>
    %51 = tpu.matmul %48, %50, %cst_18 {dimension_numbers = #tpu.dot_dimension_numbers<[2], [1], [1], [2], [0, 0, 0, 1, 1, 2], [0], [0]>} : vector<2x8x8xf32>, vector<2x8x8xf32>, vector<2x8x8xf32> -> vector<2x8x8xf32>
    "tpu.trace_stop"() : () -> ()
    %52 = vector.extract_strided_slice %47 {offsets = [2, 0, 0], sizes = [2, 8, 8], strides = [1, 1, 1]} : vector<8x8x8xf32> to vector<2x8x8xf32>
    %53 = vector.extract_strided_slice %11 {offsets = [0, 72], sizes = [16, 8], strides = [1, 1]} : vector<16x96xf32> to vector<16x8xf32>
    %54 = vector.shape_cast %53 : vector<16x8xf32> to vector<2x8x8xf32>
    "tpu.trace_start"() <{level = 10 : i32, message = "bqk,bkd->bqd"}> : () -> ()
    %cst_19 = arith.constant dense<0.000000e+00> : vector<2x8x8xf32>
    %55 = tpu.matmul %52, %54, %cst_19 {dimension_numbers = #tpu.dot_dimension_numbers<[2], [1], [1], [2], [0, 0, 0, 1, 1, 2], [0], [0]>} : vector<2x8x8xf32>, vector<2x8x8xf32>, vector<2x8x8xf32> -> vector<2x8x8xf32>
    "tpu.trace_stop"() : () -> ()
    %56 = vector.extract_strided_slice %47 {offsets = [4, 0, 0], sizes = [2, 8, 8], strides = [1, 1, 1]} : vector<8x8x8xf32> to vector<2x8x8xf32>
    %57 = vector.extract_strided_slice %11 {offsets = [0, 80], sizes = [16, 8], strides = [1, 1]} : vector<16x96xf32> to vector<16x8xf32>
    %58 = vector.shape_cast %57 : vector<16x8xf32> to vector<2x8x8xf32>
    "tpu.trace_start"() <{level = 10 : i32, message = "bqk,bkd->bqd"}> : () -> ()
    %cst_20 = arith.constant dense<0.000000e+00> : vector<2x8x8xf32>
    %59 = tpu.matmul %56, %58, %cst_20 {dimension_numbers = #tpu.dot_dimension_numbers<[2], [1], [1], [2], [0, 0, 0, 1, 1, 2], [0], [0]>} : vector<2x8x8xf32>, vector<2x8x8xf32>, vector<2x8x8xf32> -> vector<2x8x8xf32>
    "tpu.trace_stop"() : () -> ()
    %60 = vector.extract_strided_slice %47 {offsets = [6, 0, 0], sizes = [2, 8, 8], strides = [1, 1, 1]} : vector<8x8x8xf32> to vector<2x8x8xf32>
    %61 = vector.extract_strided_slice %11 {offsets = [0, 88], sizes = [16, 8], strides = [1, 1]} : vector<16x96xf32> to vector<16x8xf32>
    %62 = vector.shape_cast %61 : vector<16x8xf32> to vector<2x8x8xf32>
    "tpu.trace_start"() <{level = 10 : i32, message = "bqk,bkd->bqd"}> : () -> ()
    %cst_21 = arith.constant dense<0.000000e+00> : vector<2x8x8xf32>
    %63 = tpu.matmul %60, %62, %cst_21 {dimension_numbers = #tpu.dot_dimension_numbers<[2], [1], [1], [2], [0, 0, 0, 1, 1, 2], [0], [0]>} : vector<2x8x8xf32>, vector<2x8x8xf32>, vector<2x8x8xf32> -> vector<2x8x8xf32>
    "tpu.trace_stop"() : () -> ()
    %64 = tpu.concatenate %51, %55, %59, %63 in 2 : vector<2x8x8xf32>, vector<2x8x8xf32>, vector<2x8x8xf32>, vector<2x8x8xf32> -> vector<2x8x32xf32>
    %65 = vector.shape_cast %64 : vector<2x8x32xf32> to vector<16x32xf32>
    %66 = arith.truncf %65 : vector<16x32xf32> to vector<16x32xbf16>
    %c0_22 = arith.constant 0 : index
    %c0_23 = arith.constant 0 : index
    %c0_24 = arith.constant 0 : index
    %67 = vector.load %arg7[%c0_22, %c0_23, %c0_24] : memref<1x32x32xbf16, #tpu.memory_space<vmem>>, vector<1x32x32xbf16>
    %68 = vector.shape_cast %67 : vector<1x32x32xbf16> to vector<32x32xbf16>
    %cst_25 = arith.constant dense<0.000000e+00> : vector<16x32xf32>
    %69 = tpu.matmul %66, %68, %cst_25 {dimension_numbers = #tpu.dot_dimension_numbers<[1], [0], [0], [1], [0, 0, 1, 1], [], []>} : vector<16x32xbf16>, vector<32x32xbf16>, vector<16x32xf32> -> vector<16x32xf32>
    %c0_26 = arith.constant 0 : index
    %c0_27 = arith.constant 0 : index
    %c0_28 = arith.constant 0 : index
    %70 = vector.load %arg8[%c0_26, %c0_27, %c0_28] : memref<1x1x32xf32, #tpu.memory_space<vmem>>, vector<1x1x32xf32>
    %71 = vector.shape_cast %70 : vector<1x1x32xf32> to vector<1x32xf32>
    %72 = vector.broadcast %71 : vector<1x32xf32> to vector<16x32xf32>
    %73 = arith.addf %69, %72 : vector<16x32xf32>
    %74 = arith.addf %3, %73 : vector<16x32xf32>
    %c0_29 = arith.constant 0 : index
    %c0_30 = arith.constant 0 : index
    %c0_31 = arith.constant 0 : index
    %75 = vector.load %arg9[%c0_29, %c0_30, %c0_31] : memref<1x1x32xf32, #tpu.memory_space<vmem>>, vector<1x1x32xf32>
    %76 = vector.shape_cast %75 : vector<1x1x32xf32> to vector<1x32xf32>
    %c0_32 = arith.constant 0 : index
    %c0_33 = arith.constant 0 : index
    %c0_34 = arith.constant 0 : index
    %77 = vector.load %arg10[%c0_32, %c0_33, %c0_34] : memref<1x1x32xf32, #tpu.memory_space<vmem>>, vector<1x1x32xf32>
    %78 = vector.shape_cast %77 : vector<1x1x32xf32> to vector<1x32xf32>
    %cst_35 = arith.constant dense<0.000000e+00> : vector<16xf32>
    %79 = vector.multi_reduction <add>, %74, %cst_35 [1] : vector<16x32xf32> to vector<16xf32>
    %80 = vector.shape_cast %79 : vector<16xf32> to vector<16x1xf32>
    %cst_36 = arith.constant 3.200000e+01 : f32
    %81 = vector.broadcast %cst_36 : f32 to vector<16x1xf32>
    %82 = arith.divf %80, %81 : vector<16x1xf32>
    %83 = vector.broadcast %82 : vector<16x1xf32> to vector<16x32xf32>
    %84 = arith.subf %74, %83 : vector<16x32xf32>
    %85 = arith.mulf %84, %84 : vector<16x32xf32>
    %cst_37 = arith.constant dense<0.000000e+00> : vector<16xf32>
    %86 = vector.multi_reduction <add>, %85, %cst_37 [1] : vector<16x32xf32> to vector<16xf32>
    %87 = vector.shape_cast %86 : vector<16xf32> to vector<16x1xf32>
    %cst_38 = arith.constant 3.200000e+01 : f32
    %88 = vector.broadcast %cst_38 : f32 to vector<16x1xf32>
    %89 = arith.divf %87, %88 : vector<16x1xf32>
    %90 = vector.broadcast %82 : vector<16x1xf32> to vector<16x32xf32>
    %91 = arith.subf %74, %90 : vector<16x32xf32>
    %cst_39 = arith.constant 9.99999996E-13 : f32
    %92 = vector.broadcast %cst_39 : f32 to vector<16x1xf32>
    %93 = arith.addf %89, %92 : vector<16x1xf32>
    %94 = math.rsqrt %93 : vector<16x1xf32>
    %95 = vector.broadcast %94 : vector<16x1xf32> to vector<16x32xf32>
    %96 = arith.mulf %91, %95 : vector<16x32xf32>
    %97 = vector.broadcast %76 : vector<1x32xf32> to vector<16x32xf32>
    %98 = arith.mulf %96, %97 : vector<16x32xf32>
    %99 = vector.broadcast %78 : vector<1x32xf32> to vector<16x32xf32>
    %100 = arith.addf %98, %99 : vector<16x32xf32>
    %101 = arith.truncf %100 : vector<16x32xf32> to vector<16x32xbf16>
    %c0_40 = arith.constant 0 : index
    %c0_41 = arith.constant 0 : index
    %c0_42 = arith.constant 0 : index
    %102 = vector.load %arg11[%c0_40, %c0_41, %c0_42] : memref<1x32x64xbf16, #tpu.memory_space<vmem>>, vector<1x32x64xbf16>
    %103 = vector.shape_cast %102 : vector<1x32x64xbf16> to vector<32x64xbf16>
    %cst_43 = arith.constant dense<0.000000e+00> : vector<16x64xf32>
    %104 = tpu.matmul %101, %103, %cst_43 {dimension_numbers = #tpu.dot_dimension_numbers<[1], [0], [0], [1], [0, 0, 1, 1], [], []>} : vector<16x32xbf16>, vector<32x64xbf16>, vector<16x64xf32> -> vector<16x64xf32>
    %c0_44 = arith.constant 0 : index
    %c0_45 = arith.constant 0 : index
    %c0_46 = arith.constant 0 : index
    %105 = vector.load %arg12[%c0_44, %c0_45, %c0_46] : memref<1x1x64xf32, #tpu.memory_space<vmem>>, vector<1x1x64xf32>
    %106 = vector.shape_cast %105 : vector<1x1x64xf32> to vector<1x64xf32>
    %107 = vector.broadcast %106 : vector<1x64xf32> to vector<16x64xf32>
    %108 = arith.addf %104, %107 : vector<16x64xf32>
    %cst_47 = arith.constant 5.000000e-01 : f32
    %109 = vector.broadcast %cst_47 : f32 to vector<16x64xf32>
    %110 = arith.mulf %109, %108 : vector<16x64xf32>
    %cst_48 = arith.constant 4.471500e-02 : f32
    %111 = vector.broadcast %cst_48 : f32 to vector<16x64xf32>
    %112 = arith.mulf %111, %108 : vector<16x64xf32>
    %113 = arith.mulf %112, %108 : vector<16x64xf32>
    %114 = arith.mulf %113, %108 : vector<16x64xf32>
    %115 = arith.addf %108, %114 : vector<16x64xf32>
    %cst_49 = arith.constant 0.797884583 : f32
    %116 = vector.broadcast %cst_49 : f32 to vector<16x64xf32>
    %117 = arith.mulf %116, %115 : vector<16x64xf32>
    %118 = math.tanh %117 : vector<16x64xf32>
    %cst_50 = arith.constant 1.000000e+00 : f32
    %119 = vector.broadcast %cst_50 : f32 to vector<16x64xf32>
    %120 = arith.addf %119, %118 : vector<16x64xf32>
    %121 = arith.mulf %110, %120 : vector<16x64xf32>
    %122 = arith.truncf %121 : vector<16x64xf32> to vector<16x64xbf16>
    %c0_51 = arith.constant 0 : index
    %c0_52 = arith.constant 0 : index
    %c0_53 = arith.constant 0 : index
    %123 = vector.load %arg13[%c0_51, %c0_52, %c0_53] : memref<1x64x32xbf16, #tpu.memory_space<vmem>>, vector<1x64x32xbf16>
    %124 = vector.shape_cast %123 : vector<1x64x32xbf16> to vector<64x32xbf16>
    %cst_54 = arith.constant dense<0.000000e+00> : vector<16x32xf32>
    %125 = tpu.matmul %122, %124, %cst_54 {dimension_numbers = #tpu.dot_dimension_numbers<[1], [0], [0], [1], [0, 0, 1, 1], [], []>} : vector<16x64xbf16>, vector<64x32xbf16>, vector<16x32xf32> -> vector<16x32xf32>
    %c0_55 = arith.constant 0 : index
    %c0_56 = arith.constant 0 : index
    %c0_57 = arith.constant 0 : index
    %126 = vector.load %arg14[%c0_55, %c0_56, %c0_57] : memref<1x1x32xf32, #tpu.memory_space<vmem>>, vector<1x1x32xf32>
    %127 = vector.shape_cast %126 : vector<1x1x32xf32> to vector<1x32xf32>
    %128 = vector.broadcast %127 : vector<1x32xf32> to vector<16x32xf32>
    %129 = arith.addf %125, %128 : vector<16x32xf32>
    %130 = arith.addf %100, %129 : vector<16x32xf32>
    %c0_58 = arith.constant 0 : index
    %c0_59 = arith.constant 0 : index
    %c0_60 = arith.constant 0 : index
    %131 = vector.load %arg15[%c0_58, %c0_59, %c0_60] : memref<1x1x32xf32, #tpu.memory_space<vmem>>, vector<1x1x32xf32>
    %132 = vector.shape_cast %131 : vector<1x1x32xf32> to vector<1x32xf32>
    %c0_61 = arith.constant 0 : index
    %c0_62 = arith.constant 0 : index
    %c0_63 = arith.constant 0 : index
    %133 = vector.load %arg16[%c0_61, %c0_62, %c0_63] : memref<1x1x32xf32, #tpu.memory_space<vmem>>, vector<1x1x32xf32>
    %134 = vector.shape_cast %133 : vector<1x1x32xf32> to vector<1x32xf32>
    %cst_64 = arith.constant dense<0.000000e+00> : vector<16xf32>
    %135 = vector.multi_reduction <add>, %130, %cst_64 [1] : vector<16x32xf32> to vector<16xf32>
    %136 = vector.shape_cast %135 : vector<16xf32> to vector<16x1xf32>
    %cst_65 = arith.constant 3.200000e+01 : f32
    %137 = vector.broadcast %cst_65 : f32 to vector<16x1xf32>
    %138 = arith.divf %136, %137 : vector<16x1xf32>
    %139 = vector.broadcast %138 : vector<16x1xf32> to vector<16x32xf32>
    %140 = arith.subf %130, %139 : vector<16x32xf32>
    %141 = arith.mulf %140, %140 : vector<16x32xf32>
    %cst_66 = arith.constant dense<0.000000e+00> : vector<16xf32>
    %142 = vector.multi_reduction <add>, %141, %cst_66 [1] : vector<16x32xf32> to vector<16xf32>
    %143 = vector.shape_cast %142 : vector<16xf32> to vector<16x1xf32>
    %cst_67 = arith.constant 3.200000e+01 : f32
    %144 = vector.broadcast %cst_67 : f32 to vector<16x1xf32>
    %145 = arith.divf %143, %144 : vector<16x1xf32>
    %146 = vector.broadcast %138 : vector<16x1xf32> to vector<16x32xf32>
    %147 = arith.subf %130, %146 : vector<16x32xf32>
    %cst_68 = arith.constant 9.99999996E-13 : f32
    %148 = vector.broadcast %cst_68 : f32 to vector<16x1xf32>
    %149 = arith.addf %145, %148 : vector<16x1xf32>
    %150 = math.rsqrt %149 : vector<16x1xf32>
    %151 = vector.broadcast %150 : vector<16x1xf32> to vector<16x32xf32>
    %152 = arith.mulf %147, %151 : vector<16x32xf32>
    %153 = vector.broadcast %132 : vector<1x32xf32> to vector<16x32xf32>
    %154 = arith.mulf %152, %153 : vector<16x32xf32>
    %155 = vector.broadcast %134 : vector<1x32xf32> to vector<16x32xf32>
    %156 = arith.addf %154, %155 : vector<16x32xf32>
    %c0_69 = arith.constant 0 : index
    %c0_70 = arith.constant 0 : index
    %157 = vector.load %arg22[%c0_69, %c0_70] : memref<16x32xf32, #tpu.memory_space<vmem>>, vector<16x32xf32>
    tpu.vector_store %arg22[%c0_69, %c0_70], %156 {strides = array<i32>} : memref<16x32xf32, #tpu.memory_space<vmem>>, vector<16x32xf32>,
    %c0_71 = arith.constant 0 : index
    %c0_72 = arith.constant 0 : index
    %c0_73 = arith.constant 0 : index
    %158 = vector.load %arg20[%c0_71, %c0_72, %c0_73] : memref<1x16x32xf32, #tpu.memory_space<vmem>>, vector<1x16x32xf32>
    %159 = vector.shape_cast %158 : vector<1x16x32xf32> to vector<16x32xf32>
    %160 = vector.shape_cast %156 : vector<16x32xf32> to vector<1x16x32xf32>
    tpu.vector_store %arg20[%c0_71, %c0_72, %c0_73], %160 {strides = array<i32>} : memref<1x16x32xf32, #tpu.memory_space<vmem>>, vector<1x16x32xf32>,
    %c1_i32 = arith.constant 1 : i32
    %161 = arith.cmpi eq, %arg0, %c1_i32 : i32
    %162 = arith.extui %161 : i1 to i32
    %c0_i32_74 = arith.constant 0 : i32
    %163 = arith.cmpi ne, %162, %c0_i32_74 : i32
    scf.if %163 {
      %164 = vector.extract_strided_slice %156 {offsets = [0, 0], sizes = [1, 32], strides = [1, 1]} : vector<16x32xf32> to vector<1x32xf32>
      %165 = vector.extract_strided_slice %156 {offsets = [8, 0], sizes = [1, 32], strides = [1, 1]} : vector<16x32xf32> to vector<1x32xf32>
      %166 = tpu.concatenate %164, %165 in 0 : vector<1x32xf32>, vector<1x32xf32> -> vector<2x32xf32>
      %167 = arith.truncf %166 : vector<2x32xf32> to vector<2x32xbf16>
      %c0_75 = arith.constant 0 : index
      %c0_76 = arith.constant 0 : index
      %168 = vector.load %arg17[%c0_75, %c0_76] : memref<32x32xbf16, #tpu.memory_space<vmem>>, vector<32x32xbf16>
      %cst_77 = arith.constant dense<0.000000e+00> : vector<2x32xf32>
      %169 = tpu.matmul %167, %168, %cst_77 {dimension_numbers = #tpu.dot_dimension_numbers<[1], [0], [0], [1], [0, 0, 1, 1], [], []>} : vector<2x32xbf16>, vector<32x32xbf16>, vector<2x32xf32> -> vector<2x32xf32>
      %c0_78 = arith.constant 0 : index
      %c0_79 = arith.constant 0 : index
      %170 = vector.load %arg18[%c0_78, %c0_79] : memref<1x32xf32, #tpu.memory_space<vmem>>, vector<1x32xf32>
      %171 = vector.broadcast %170 : vector<1x32xf32> to vector<2x32xf32>
      %172 = arith.addf %169, %171 : vector<2x32xf32>
      %173 = math.tanh %172 : vector<2x32xf32>
      %c0_80 = arith.constant 0 : index
      %c0_81 = arith.constant 0 : index
      %174 = vector.load %arg21[%c0_80, %c0_81] : memref<2x32xf32, #tpu.memory_space<vmem>>, vector<2x32xf32>
      tpu.vector_store %arg21[%c0_80, %c0_81], %173 {strides = array<i32>} : memref<2x32xf32, #tpu.memory_space<vmem>>, vector<2x32xf32>,
    } else {
    }
    return
  }
  func.func @transform_0(%arg0: i32) -> (i32, i32) {
    %c0_i32 = arith.constant 0 : i32
    %c0_i32_0 = arith.constant 0 : i32
    %c0_i32_1 = arith.constant 0 : i32
    return %c0_i32, %c0_i32_0 : i32, i32
  }
  func.func @transform_1(%arg0: i32) -> (i32, i32, i32) {
    %c0_i32 = arith.constant 0 : i32
    %c0_i32_0 = arith.constant 0 : i32
    %c0_i32_1 = arith.constant 0 : i32
    %c0_i32_2 = arith.constant 0 : i32
    return %c0_i32, %c0_i32_0, %c0_i32_1 : i32, i32, i32
  }
  func.func @transform_2(%arg0: i32) -> (i32, i32) {
    %c0_i32 = arith.constant 0 : i32
    %c0_i32_0 = arith.constant 0 : i32
    %c0_i32_1 = arith.constant 0 : i32
    return %c0_i32, %c0_i32_0 : i32, i32
  }
  func.func @transform_3(%arg0: i32) -> (i32, i32) {
    %c0_i32 = arith.constant 0 : i32
    %c0_i32_0 = arith.constant 0 : i32
    %c0_i32_1 = arith.constant 0 : i32
    return %c0_i32, %c0_i32_0 : i32, i32
  }
  func.func @transform_4(%arg0: i32) -> (i32, i32, i32) {
    %c0_i32 = arith.constant 0 : i32
    %c0_i32_0 = arith.constant 0 : i32
    %c0_i32_1 = arith.constant 0 : i32
    return %arg0, %c0_i32, %c0_i32_0 : i32, i32, i32
  }
  func.func @transform_5(%arg0: i32) -> (i32, i32, i32) {
    %c0_i32 = arith.constant 0 : i32
    %c0_i32_0 = arith.constant 0 : i32
    %c0_i32_1 = arith.constant 0 : i32
    return %arg0, %c0_i32, %c0_i32_0 : i32, i32, i32
  }
  func.func @transform_6(%arg0: i32) -> (i32, i32, i32) {
    %c0_i32 = arith.constant 0 : i32
    %c0_i32_0 = arith.constant 0 : i32
    %c0_i32_1 = arith.constant 0 : i32
    return %arg0, %c0_i32, %c0_i32_0 : i32, i32, i32
  }
  func.func @transform_7(%arg0: i32) -> (i32, i32, i32) {
    %c0_i32 = arith.constant 0 : i32
    %c0_i32_0 = arith.constant 0 : i32
    %c0_i32_1 = arith.constant 0 : i32
    return %arg0, %c0_i32, %c0_i32_0 : i32, i32, i32
  }
  func.func @transform_8(%arg0: i32) -> (i32, i32, i32) {
    %c0_i32 = arith.constant 0 : i32
    %c0_i32_0 = arith.constant 0 : i32
    %c0_i32_1 = arith.constant 0 : i32
    return %arg0, %c0_i32, %c0_i32_0 : i32, i32, i32
  }
  func.func @transform_9(%arg0: i32) -> (i32, i32, i32) {
    %c0_i32 = arith.constant 0 : i32
    %c0_i32_0 = arith.constant 0 : i32
    %c0_i32_1 = arith.constant 0 : i32
    return %arg0, %c0_i32, %c0_i32_0 : i32, i32, i32
  }
  func.func @transform_10(%arg0: i32) -> (i32, i32, i32) {
    %c0_i32 = arith.constant 0 : i32
    %c0_i32_0 = arith.constant 0 : i32
    %c0_i32_1 = arith.constant 0 : i32
    return %arg0, %c0_i32, %c0_i32_0 : i32, i32, i32
  }
  func.func @transform_11(%arg0: i32) -> (i32, i32, i32) {
    %c0_i32 = arith.constant 0 : i32
    %c0_i32_0 = arith.constant 0 : i32
    %c0_i32_1 = arith.constant 0 : i32
    return %arg0, %c0_i32, %c0_i32_0 : i32, i32, i32
  }
  func.func @transform_12(%arg0: i32) -> (i32, i32, i32) {
    %c0_i32 = arith.constant 0 : i32
    %c0_i32_0 = arith.constant 0 : i32
    %c0_i32_1 = arith.constant 0 : i32
    return %arg0, %c0_i32, %c0_i32_0 : i32, i32, i32
  }
  func.func @transform_13(%arg0: i32) -> (i32, i32, i32) {
    %c0_i32 = arith.constant 0 : i32
    %c0_i32_0 = arith.constant 0 : i32
    %c0_i32_1 = arith.constant 0 : i32
    return %arg0, %c0_i32, %c0_i32_0 : i32, i32, i32
  }
  func.func @transform_14(%arg0: i32) -> (i32, i32, i32) {
    %c0_i32 = arith.constant 0 : i32
    %c0_i32_0 = arith.constant 0 : i32
    %c0_i32_1 = arith.constant 0 : i32
    return %arg0, %c0_i32, %c0_i32_0 : i32, i32, i32
  }
  func.func @transform_15(%arg0: i32) -> (i32, i32, i32) {
    %c0_i32 = arith.constant 0 : i32
    %c0_i32_0 = arith.constant 0 : i32
    %c0_i32_1 = arith.constant 0 : i32
    return %arg0, %c0_i32, %c0_i32_0 : i32, i32, i32
  }
  func.func @transform_16(%arg0: i32) -> (i32, i32) {
    %c0_i32 = arith.constant 0 : i32
    %c0_i32_0 = arith.constant 0 : i32
    %c0_i32_1 = arith.constant 0 : i32
    return %c0_i32, %c0_i32_0 : i32, i32
  }
  func.func @transform_17(%arg0: i32) -> (i32, i32) {
    %c0_i32 = arith.constant 0 : i32
    %c0_i32_0 = arith.constant 0 : i32
    %c0_i32_1 = arith.constant 0 : i32
    return %c0_i32, %c0_i32_0 : i32, i32
  }
  func.func @transform_18(%arg0: i32) -> (i32, i32) {
    %c0_i32 = arith.constant 0 : i32
    %c0_i32_0 = arith.constant 0 : i32
    %c0_i32_1 = arith.constant 0 : i32
    return %c0_i32, %c0_i32_0 : i32, i32
  }
  func.func @transform_19(%arg0: i32) -> (i32, i32, i32) {
    %c0_i32 = arith.constant 0 : i32
    %c0_i32_0 = arith.constant 0 : i32
    %c0_i32_1 = arith.constant 0 : i32
    return %arg0, %c0_i32, %c0_i32_0 : i32, i32, i32
  }
  func.func @transform_20(%arg0: i32) -> (i32, i32) {
    %c0_i32 = arith.constant 0 : i32
    %c0_i32_0 = arith.constant 0 : i32
    %c0_i32_1 = arith.constant 0 : i32
    return %c0_i32, %c0_i32_0 : i32, i32
  }
}

</mosaic_0001>

<bundles_post_ra>
// kernel: bert_backbone_forward.1
= control target key start
LH: loop header
LB: loop body
LE: loop exit
PB: predicated region body
PF: predicated region fallthrough
CT: control target
= control target key end

     0   :  { %s3955_s0 = inlined_call_operand.vmem [shape: f32[16,32], index: 0, kind: input, shape index: {}]   ;;  %s3956_s1 = inlined_call_operand.vmem [shape: f32[8,1,8], index: 1, kind: input, shape index: {}]   ;;  %s3957_s2 = inlined_call_operand.vmem [shape: f32[1,32], index: 2, kind: input, shape index: {}]   ;;  %s3958_s3 = inlined_call_operand.vmem [shape: f32[1,32], index: 3, kind: input, shape index: {}]   ;;  %s3959_s4 = inlined_call_operand.vmem [shape: bf16[2,32,96], index: 4, kind: input, shape index: {}]   ;;  %s3960_s5 = inlined_call_operand.vmem [shape: f32[2,1,96], index: 5, kind: input, shape index: {}]   ;;  %s3961_s6 = inlined_call_operand.vmem [shape: bf16[2,32,32], index: 6, kind: input, shape index: {}]   ;;  %s3962_s7 = inlined_call_operand.vmem [shape: f32[2,1,32], index: 7, kind: input, shape index: {}]   ;;  %s3963_s8 = inlined_call_operand.vmem [shape: f32[2,1,32], index: 8, kind: input, shape index: {}]   ;;  %s3964_s9 = inlined_call_operand.vmem [shape: f32[2,1,32], index: 9, kind: input, shape index: {}]   ;;  %s3965_s10 = inlined_call_operand.vmem [shape: bf16[2,32,64], index: 10, kind: input, shape index: {}]   ;;  %s3966_s11 = inlined_call_operand.vmem [shape: f32[2,1,64], index: 11, kind: input, shape index: {}]   ;;  %s3967_s12 = inlined_call_operand.vmem [shape: bf16[2,64,32], index: 12, kind: input, shape index: {}]   ;;  %s3968_s13 = inlined_call_operand.vmem [shape: f32[2,1,32], index: 13, kind: input, shape index: {}]   ;;  %s3969_s14 = inlined_call_operand.vmem [shape: f32[2,1,32], index: 14, kind: input, shape index: {}]   ;;  %s3970_s15 = inlined_call_operand.vmem [shape: f32[2,1,32], index: 15, kind: input, shape index: {}]   ;;  %s3971_s16 = inlined_call_operand.vmem [shape: bf16[32,32], index: 16, kind: input, shape index: {}]   ;;  %s3972_s17 = inlined_call_operand.vmem [shape: f32[1,32], index: 17, kind: input, shape index: {}]   ;;  %s3973_s18 = inlined_call_operand.hbm [shape: f32[16,32], index: 18, kind: output, shape index: {0}]   ;;  %s3974_s19 = inlined_call_operand.vmem [shape: f32[2,16,32], index: 19, kind: output, shape index: {1}]   ;;  %s3975_s20 = inlined_call_operand.hbm [shape: f32[2,32], index: 20, kind: output, shape index: {2}]  }
   0x1   :  { %3983 = sst [smem:[#allocation11_spill]] %s3955_s0 }
   0x2   :  { %3984 = sst [smem:[#allocation12_spill]] %s3956_s1 }
   0x3   :  { %3985 = sst [smem:[#allocation13_spill]] %s3957_s2 }
   0x4   :  { %3986 = sst [smem:[#allocation14_spill]] %s3958_s3 }
   0x5   :  { %3987 = sst [smem:[#allocation15_spill]] %s3959_s4 }
   0x6   :  { %3988 = sst [smem:[#allocation16_spill]] %s3961_s6 }
   0x7   :  { %3989 = sst [smem:[#allocation17_spill]] %s3965_s10 }
   0x8   :  { %3990 = sst [smem:[#allocation18_spill]] %s3971_s16 }
   0x9   :  { %3991 = sst [smem:[#allocation19_spill]] %s3972_s17 }
   0xa   :  { %3992 = sst [smem:[#allocation20_spill]] %s3973_s18 }
   0xb   :  { %3993 = sst [smem:[#allocation21_spill]] %s3975_s20 }
   0xc   :  { %26 = vsyncpa [#allocation4], 0 }
   0xd   :  { %27 = vsyncpa [#allocation6], 0  ;;  %s3549_s1 = smov 0  }
   0xe LB: > { %3994 = sst [smem:[#allocation9_spill]] %s3421_s1  ;;  %s3555_s22 = sadd.s32 4294967295, %s3421_s1   ;;  %s3421_s1 = sphi %s3549_s1, %s33_s1  }
   0xf   : > { %p2980_p0 = scmp.ge.s32.totalorder %s3421_s1, 1  ;;  %p653_p1 = scmp.lt.s32.totalorder %s3421_s1, 3 }
  0x11   : > { %p654_p2 = pnand %p2980_p0, %p653_p1 }
  0x13   : > { %657 = sbr.rel (%p654_p2) target bundleno = 3184 (0xc70), region = 92 }
  0x1a   : > { %p750_p3 = scmp.lt.s32.totalorder %s3555_s22, 1  ;;  %s3995_s28 = sld [smem:[#allocation15_spill]] }
  0x1b   : > { %s3996_s6 = sld [smem:[#allocation16_spill]]  ;;  %s3998_s10 = sld [smem:[#allocation17_spill]] }
  0x1c   : > { %s3561_s23 = scalar_select %p750_p3, %s3555_s22, 1 }
  0x1d   : > { %p2991_p4 = scmp.ne.s32.totalorder %s3555_s22, 0 }
  0x1e   : > { %s3059_s24 = sshll.u32 %s3561_s23, 4  ;;  %s787_s2 = scalar_lea.vmem %s3968_s13, %s3561_s23  ;;  %vm808_vm0 = vcmask (!%p2991_p4), 261120  }
  0x1f   : > { %s790_s26 = scalar_lea.vmem %s3969_s14, %s3561_s23  ;;  %803 = sbr.rel (%p2991_p4) target bundleno = 357 (0x165), region = 96 }
  0x20   : > { %s3571_s4 = scalar_lea.vmem %s3995_s28, %s3059_s24  ;;  %s3999_s21 = sld [smem:[#allocation11_spill]] (!%p2991_p4) }
  0x21   : > { %s3576_s0 = scalar_lea.vmem %s3996_s6, %s3059_s24  ;;  %s3593_s28 = scalar_lea.vmem %s3998_s10, %s3059_s24 }
  0x22   : > { %3997 = sst [smem:[#allocation10_spill]] %s3576_s0  ;;  %s3062_s0 = sshll.u32 %s3561_s23, 5 }
  0x23   : > { %s3603_s20 = scalar_lea.vmem %s3967_s12, %s3062_s0  ;;  %s793_s10 = scalar_lea.vmem %s3970_s15, %s3561_s23 }
  0x24   : > { %s3620_s6 = scalar_lea.vmem %s3974_s19, %s3059_s24  ;;  %s4000_s18 = sld [smem:[#allocation13_spill]] (!%p2991_p4) }
  0x25   : > { %s4001_s29 = sld [smem:[#allocation14_spill]] (!%p2991_p4) }
  0x26   : > { %v804_v0 = vld [vmem:[%s3999_s21] sm:$0xff]  ;;  %v805_v1 = vld [vmem:[%s3999_s21 + $0x8] sm:$0xff] }
  0x27   : > { %v809_v2 = vsel %vm808_vm0, %v804_v0, 0.0  ;;  %v812_v3 = vsel %vm808_vm0, %v805_v1, 0.0 }
  0x28   : > { %810 = vadd.xlane.f32.xlu0 %v809_v2 }
  0x2a   : > { %v2992_v21 = vld [vmem:[%s4000_s18] ss:$0 sm:$0xff] }
  0x2b   : > { %v2993_v23 = vld [vmem:[%s4001_s29] ss:$0 sm:$0xff] }
  0x2c   : > { %813 = vadd.xlane.f32.xlu0 %v812_v3 }
  0xb5   : > { %v811_v4 = vpop.xlane.xlu0 %810 }
  0xb6   : > { %v816_v5 = vmul.f32 0.03125, %v811_v4 }
  0xb8   : > { %v818_v6 = vsub.f32 %v804_v0, %v816_v5 }
  0xb9   : > { %v814_v7 = vpop.xlane.xlu0 %813 }
  0xba   : > { %v817_v8 = vmul.f32 0.03125, %v814_v7  ;;  %v820_v9 = vmul.f32 %v818_v6, %v818_v6 }
  0xbc   : > { %v819_v10 = vsub.f32 %v805_v1, %v817_v8  ;;  %v822_v11 = vsel %vm808_vm0, %v820_v9, 0.0 }
  0xbd   : > { %823 = vadd.xlane.f32.xlu1 %v822_v11 }
  0xbe   : > { %v821_v12 = vmul.f32 %v819_v10, %v819_v10 }
  0xc0   : > { %v825_v13 = vsel %vm808_vm0, %v821_v12, 0.0 }
  0xc1   : > { %826 = vadd.xlane.f32.xlu1 %v825_v13 }
 0x14a   : > { %v824_v14 = vpop.xlane.xlu1 %823 }
 0x14b   : > { %v828_v15 = vmul.f32 0.03125, %v824_v14 }
 0x14d   : > { %v830_v16 = vadd.f32 1e-12, %v828_v15 }
 0x14e   : > { %v827_v17 = vpop.xlane.xlu1 %826 }
 0x14f   : > { %3278 = vrsqrt.f32 %v830_v16  ;;  %v829_v18 = vmul.f32 0.03125, %v827_v17 }
 0x151   : > { %v831_v19 = vadd.f32 1e-12, %v829_v18 }
 0x153   : > { %3280 = vrsqrt.f32 %v831_v19 }
 0x159   : > { %v3279_v20 = vpop.eup %3278 }
 0x15a   : > { %v834_v22 = vmul.f32 %v3279_v20, %v818_v6 }
 0x15c   : > { %v842_v24 = vmul.f32 %v2992_v21, %v834_v22 }
 0x15d   : > { %v3281_v25 = vpop.eup %3280 }
 0x15e   : > { %v850_v26 = vadd.f32 %v2993_v23, %v842_v24  ;;  %v835_v27 = vmul.f32 %v3281_v25, %v819_v10 }
 0x160   : > { %852 = vst.msk [vmem:[#allocation2] sm:$0xff] %vm808_vm0, %v850_v26  ;;  %854 = vst.msk [vmem:[#allocation3] sm:$0xff] %vm808_vm0, %v850_v26  ;;  %v843_v28 = vmul.f32 %v2992_v21, %v835_v27 }
 0x162   : > { %v851_v29 = vadd.f32 %v2993_v23, %v843_v28 }
 0x164   : > { %853 = vst.msk [vmem:[#allocation2 + $0x8] sm:$0xff] %vm808_vm0, %v851_v29  ;;  %855 = vst.msk [vmem:[#allocation3 + $0x8] sm:$0xff] %vm808_vm0, %v851_v29 }
 0x165 PF: > { %v3297_v30 = vld [vmem:[%s3571_s4] sm:$0xff]   ;;  %v3423_v31 = vmov 0.0   ;;  %v3298_v32 = vld [vmem:[%s3571_s4 + $0x8] sm:$0xff]   ;;  %vm3424_vm1 = vmmov 0   ;;  %vm882_vm2 = vcmask 261120   ;;  %s4002_s0 = scalar_lea.vmem %s3960_s5, %s3561_s23  ;;  %s3425_s1 = smov 88  }
 0x166   : > { %3113 = vmatprep.subr.bf16.mxu0 %v3423_v31  ;;  %3126 = vmatprep.subr.mxu1 %v3423_v31  ;;  %v2994_v36 = vld [vmem:[%s4002_s0] ss:$0 sm:$0xff]  ;;  %s3426_s17 = smov 96   ;;  %s3427_s3 = smov 120   ;;  %vm930_vm3 = vcmask 64512   ;;  %vm2344_vm4 = vcmask 130048  }
 0x167   : > { %3114 = vmatpush3.bf16.msra.mxu0 %v3297_v30  ;;  %3117 = vmatprep.mubr.msk.bf16.mxu0 %vm3424_vm1, %v3423_v31  ;;  %v3649_v33 = vld [vmem:[#allocation2] sm:$0xff]  ;;  %s3428_s16 = smov 80   ;;  %s3429_s24 = smov 112   ;;  %vm2347_vm5 = vcmask 195584   ;;  %vm2591_vm6 = vcmask 523264  }
 0x168   : > { %3115 = vmatprep.subr.bf16.mxu0 %v3423_v31  ;;  %3128 = vmatprep.mubr.msk.f32.mxu1 %vm3424_vm1, %v3423_v31  ;;  %s3430_s18 = smov 72   ;;  %s3431_s25 = smov 104  }
 0x169   : > { %s4003_s4 = sld [smem:[#allocation12_spill]]  ;;  %s3437_s27 = smov 16  }
 0x16a   : > { %s3438_s29 = smov 24   ;;  %s4008_s30 = scalar_lea.vmem %s3966_s11, %s3561_s23 }
 0x16b   : > { %v3651_v34 = vld [vmem:[#allocation2 + $0x8] sm:$0xff]  ;;  %3116 = vmatpush3.bf16.msra.mxu0 %v3298_v32  ;;  %p3048_p5 = scmp.ne.s32.totalorder %s3555_s22, 1 }
 0x16c   : > { %v858_v35 = vpack.c.bf16 %v3651_v34, %v3649_v33  ;;  %3121 = vmatprep.subr.mxu0 %v3423_v31  ;;  %vm3440_vm7 = vmmov (!%p3048_p5), 0   ;;  %vm2693_vm8 = vcmask (!%p3048_p5), 1040384   ;;  %vm2763_vm9 = vcmask (!%p3048_p5), 254976  }
 0x16e   : > { %3118 = vmatmul.mubr.msk.bf16.vlgmr.msra.gmra.mrb[0].mxu0 %vm882_vm2, %v858_v35 }
 0x16f   : > { %3123 = vmatprep.mubr.msk.f32.mxu0 %vm3424_vm1, %v3423_v31  ;;  %v3014_v58 = vld [vmem:[%s4003_s4] ss:$0 sm:$0xff]  ;;  %v3017_v0 = vld [vmem:[%s4003_s4 + $0x3] ss:$0 sm:$0xff]  ;;  %v3015_v5 = vld [vmem:[%s4003_s4 + $0x1] ss:$0 sm:$0xff] }
 0x170   : > { %v3016_v11 = vld [vmem:[%s4003_s4 + $0x2] ss:$0 sm:$0xff]  ;;  %v3019_v18 = vld [vmem:[%s4003_s4 + $0x5] ss:$0 sm:$0xff]  ;;  %v3018_v21 = vld [vmem:[%s4003_s4 + $0x4] ss:$0 sm:$0xff] }
 0x171   : > { %v3020_v27 = vld [vmem:[%s4003_s4 + $0x6] ss:$0 sm:$0xff]  ;;  %v3021_v35 = vld [vmem:[%s4003_s4 + $0x7] ss:$0 sm:$0xff] }
 0x241   : > { %v920_v37 = vpop.f32.mrb[0].mxu0 }
 0x242   : > { %v3667_v38 = vadd.f32 %v2994_v36, %v920_v37  ;;  %v3119_v39 = vpop.f32.mrb[1].mxu0 }
 0x243   : > { %v923_v40 = vpop.f32.mrb[2].mxu0 }
 0x244   : > { %1084 = vrot.lane.b32.xlu1 %v3667_v38, %s3425_s1  ;;  %928 = vrot.lane.b32.xlu0 %v3667_v38, %s3426_s17  ;;  %v3120_v41 = vpop.f32.mrb[3].mxu0  ;;  %v3671_v42 = vadd.f32 %v2994_v36, %v923_v40 }
 0x248   : > { %1082 = vrot.lane.b32.xlu0 %v3667_v38, %s3427_s3  ;;  %1162 = vrot.lane.b32.xlu1 %v3671_v42, %s3425_s1  ;;  %s4005_s1 = scalar_lea.vmem %s3962_s7, %s3561_s23 }
 0x24c   : > { %1160 = vrot.lane.b32.xlu1 %v3671_v42, %s3427_s3  ;;  %1006 = vrot.lane.b32.xlu0 %v3671_v42, %s3426_s17  ;;  %s3432_s17 = smov 64   ;;  %s3433_s3 = smov 56  }
 0x250   : > { %1318 = vrot.lane.b32.xlu1 %v3671_v42, %s3428_s16  ;;  %1240 = vrot.lane.b32.xlu0 %v3667_v38, %s3428_s16  ;;  %s3434_s16 = smov 48  }
 0x254   : > { %1316 = vrot.lane.b32.xlu1 %v3671_v42, %s3429_s24  ;;  %1238 = vrot.lane.b32.xlu0 %v3667_v38, %s3429_s24  ;;  %s3435_s24 = smov 40  }
 0x258   : > { %1474 = vrot.lane.b32.xlu1 %v3671_v42, %s3430_s18  ;;  %1396 = vrot.lane.b32.xlu0 %v3667_v38, %s3430_s18  ;;  %s4004_s18 = sld [smem:[#allocation10_spill]] }
 0x25c   : > { %1472 = vrot.lane.b32.xlu1 %v3671_v42, %s3431_s25  ;;  %1394 = vrot.lane.b32.xlu0 %v3667_v38, %s3431_s25  ;;  %s3436_s25 = smov 8  }
 0x2b6   : > { %v1085_v43 = vpop.permute.xlu1 %1084  ;;  %v929_v44 = vpop.permute.xlu0 %928 }
 0x2b7   : > { %3122 = vmatpush3.xpose.msk.msra.mxu0 %vm930_vm3, %v929_v44 }
 0x2b8   : > { %3136 = vmatprep.subr.mxu0 %v3423_v31 }
 0x2ba   : > { %3124 = vmatmul.mubr.msk.f32.vlgmr.msra.gmra.mrb[4].mxu0 %vm930_vm3, %v3667_v38  ;;  %v1083_v45 = vpop.permute.xlu0 %1082  ;;  %v1163_v46 = vpop.permute.xlu1 %1162 }
 0x2bb   : > { %3137 = vmatpush3.xpose.msk.msra.mxu0 %vm930_vm3, %v1163_v46  ;;  %3138 = vmatprep.mubr.msk.f32.mxu0 %vm3424_vm1, %v3423_v31 }
 0x2bc   : > { %3146 = vmatprep.subr.mxu0 %v3423_v31 }
 0x2be   : > { %v1161_v47 = vpop.permute.xlu1 %1160  ;;  %v1007_v48 = vpop.permute.xlu0 %1006 }
 0x2bf   : > { %3127 = vmatpush3.xpose.msk.msra.mxu1 %vm930_vm3, %v1007_v48  ;;  %3139 = vmatmul.mubr.msk.f32.vlgmr.msra.gmra.mrb[6].mxu0 %vm930_vm3, %v1161_v47 }
 0x2c0   : > { %3131 = vmatprep.subr.mxu1 %v3423_v31  ;;  %3148 = vmatprep.mubr.msk.f32.mxu0 %vm3424_vm1, %v3423_v31 }
 0x2c2   : > { %v1319_v49 = vpop.permute.xlu1 %1318  ;;  %3129 = vmatmul.mubr.msk.f32.vlgmr.msra.gmra.mrb[0].mxu1 %vm930_vm3, %v3671_v42  ;;  %v1241_v50 = vpop.permute.xlu0 %1240 }
 0x2c3   : > { %3132 = vmatpush3.xpose.msk.msra.mxu1 %vm930_vm3, %v1085_v43  ;;  %3147 = vmatpush3.xpose.msk.msra.mxu0 %vm930_vm3, %v1319_v49 }
 0x2c4   : > { %3133 = vmatprep.mubr.msk.f32.mxu1 %vm3424_vm1, %v3423_v31  ;;  %3141 = vmatprep.subr.mxu1 %v3423_v31 }
 0x2c5   : > { %3156 = vmatprep.subr.mxu0 %v3423_v31 }
 0x2c6   : > { %v1317_v51 = vpop.permute.xlu1 %1316  ;;  %3134 = vmatmul.mubr.msk.f32.vlgmr.msra.gmra.mrb[2].mxu1 %vm930_vm3, %v1083_v45  ;;  %v1239_v52 = vpop.permute.xlu0 %1238 }
 0x2c7   : > { %3142 = vmatpush3.xpose.msk.msra.mxu1 %vm930_vm3, %v1241_v50  ;;  %3149 = vmatmul.mubr.msk.f32.vlgmr.msra.gmra.mrb[8].mxu0 %vm930_vm3, %v1317_v51 }
 0x2c8   : > { %3143 = vmatprep.mubr.msk.f32.mxu1 %vm3424_vm1, %v3423_v31  ;;  %3151 = vmatprep.subr.mxu1 %v3423_v31 }
 0x2c9   : > { %3158 = vmatprep.mubr.msk.f32.mxu0 %vm3424_vm1, %v3423_v31 }
 0x2ca   : > { %v1475_v53 = vpop.permute.xlu1 %1474  ;;  %3144 = vmatmul.mubr.msk.f32.vlgmr.msra.gmra.mrb[4].mxu1 %vm930_vm3, %v1239_v52  ;;  %v1397_v54 = vpop.permute.xlu0 %1396 }
 0x2cb   : > { %3152 = vmatpush3.xpose.msk.msra.mxu1 %vm930_vm3, %v1397_v54  ;;  %3157 = vmatpush3.xpose.msk.msra.mxu0 %vm930_vm3, %v1475_v53 }
 0x2cc   : > { %3153 = vmatprep.mubr.msk.f32.mxu1 %vm3424_vm1, %v3423_v31  ;;  %3161 = vmatprep.subr.mxu1 %v3423_v31 }
 0x2cd   : > { %3166 = vmatprep.subr.mxu0 %v3423_v31 }
 0x2ce   : > { %v1473_v55 = vpop.permute.xlu1 %1472  ;;  %v1395_v56 = vpop.permute.xlu0 %1394 }
 0x2cf   : > { %3154 = vmatmul.mubr.msk.f32.vlgmr.msra.gmra.mrb[6].mxu1 %vm930_vm3, %v1395_v56  ;;  %3159 = vmatmul.mubr.msk.f32.vlgmr.msra.gmra.mrb[10].mxu0 %vm930_vm3, %v1473_v55 }
 0x2d0   : > { %3163 = vmatprep.mubr.msk.f32.mxu1 %vm3424_vm1, %v3423_v31  ;;  %3168 = vmatprep.mubr.msk.f32.mxu0 %vm3424_vm1, %v3423_v31 }
 0x38d   : > { %v1001_v57 = vpop.f32.mrb[4].mxu0 }
 0x38e   : > { %v1550_v59 = vmul.f32 0.35355338, %v1001_v57  ;;  %v3125_v60 = vpop.f32.mrb[5].mxu0 }
 0x390   : > { %v3730_v61 = vadd.f32 %v3014_v58, %v1550_v59 }
 0x392   : > { %v1234_v62 = vpop.f32.mrb[6].mxu0  ;;  %v1622_v63 = vsel %vm930_vm3, %v3730_v61, -inf }
 0x393   : > { %v1553_v1 = vmul.f32 0.35355338, %v1234_v62  ;;  %1623 = vmax.xlane.f32.xlu0 %v1622_v63  ;;  %v3140_v2 = vpop.f32.mrb[7].mxu0 }
 0x395   : > { %v1078_v3 = vpop.f32.mrb[0].mxu1  ;;  %v1617_v4 = vadd.f32 %v3017_v0, %v1553_v1 }
 0x396   : > { %v1551_v6 = vmul.f32 0.35355338, %v1078_v3  ;;  %v3130_v7 = vpop.f32.mrb[1].mxu1 }
 0x397   : > { %v1631_v8 = vsel %vm930_vm3, %v1617_v4, -inf }
 0x398   : > { %1632 = vmax.xlane.f32.xlu0 %v1631_v8  ;;  %v1615_v9 = vadd.f32 %v3015_v5, %v1551_v6 }
 0x399   : > { %v1156_v10 = vpop.f32.mrb[2].mxu1 }
 0x39a   : > { %v1552_v12 = vmul.f32 0.35355338, %v1156_v10  ;;  %v3135_v13 = vpop.f32.mrb[3].mxu1  ;;  %v1390_v14 = vpop.f32.mrb[8].mxu0  ;;  %v1625_v15 = vsel %vm930_vm3, %v1615_v9, -inf }
 0x39b   : > { %v1555_v16 = vmul.f32 0.35355338, %v1390_v14  ;;  %1626 = vmax.xlane.f32.xlu1 %v1625_v15  ;;  %v3150_v17 = vpop.f32.mrb[9].mxu0 }
 0x39c   : > { %v1616_v19 = vadd.f32 %v3016_v11, %v1552_v12 }
 0x39d   : > { %v1312_v20 = vpop.f32.mrb[4].mxu1  ;;  %v1619_v25 = vadd.f32 %v3019_v18, %v1555_v16 }
 0x39e   : > { %v1554_v22 = vmul.f32 0.35355338, %v1312_v20  ;;  %v3145_v23 = vpop.f32.mrb[5].mxu1  ;;  %v1628_v24 = vsel %vm930_vm3, %v1616_v19, -inf }
 0x39f   : > { %1629 = vmax.xlane.f32.xlu0 %v1628_v24  ;;  %v1637_v32 = vsel %vm930_vm3, %v1619_v25, -inf }
 0x3a0   : > { %v1618_v26 = vadd.f32 %v3018_v21, %v1554_v22 }
 0x3a2   : > { %v1468_v28 = vpop.f32.mrb[6].mxu1  ;;  %v1546_v29 = vpop.f32.mrb[10].mxu0  ;;  %v1634_v30 = vsel %vm930_vm3, %v1618_v26, -inf }
 0x3a3   : > { %v1556_v36 = vmul.f32 0.35355338, %v1468_v28  ;;  %v1557_v37 = vmul.f32 0.35355338, %v1546_v29  ;;  %1635 = vmax.xlane.f32.xlu1 %v1634_v30  ;;  %v3155_v39 = vpop.f32.mrb[7].mxu1  ;;  %1638 = vmax.xlane.f32.xlu0 %v1637_v32  ;;  %v3160_v40 = vpop.f32.mrb[11].mxu0 }
 0x3a5   : > { %v1620_v41 = vadd.f32 %v3020_v27, %v1556_v36  ;;  %v1621_v43 = vadd.f32 %v3021_v35, %v1557_v37 }
 0x3a7   : > { %v1640_v44 = vsel %vm930_vm3, %v1620_v41, -inf  ;;  %v1643_v45 = vsel %vm930_vm3, %v1621_v43, -inf }
 0x3a8   : > { %1641 = vmax.xlane.f32.xlu1 %v1640_v44  ;;  %1644 = vmax.xlane.f32.xlu0 %v1643_v45 }
 0x3b9   : > { %1710 = vrot.lane.b32.xlu1 %v3667_v38, %s3432_s17 }
 0x3bd   : > { %1862 = vrot.lane.b32.xlu1 %v3667_v38, %s3433_s3 }
 0x3be   : > { %1786 = vrot.lane.b32.xlu0 %v3671_v42, %s3432_s17 }
 0x3c1   : > { %1938 = vrot.lane.b32.xlu1 %v3671_v42, %s3433_s3 }
 0x3c2   : > { %2014 = vrot.lane.b32.xlu0 %v3667_v38, %s3434_s16 }
 0x3c5   : > { %2090 = vrot.lane.b32.xlu1 %v3671_v42, %s3434_s16  ;;  %s4006_s16 = scalar_lea.vmem %s3963_s8, %s3561_s23 }
 0x420   : > { %v1624_v46 = vpop.xlane.xlu0 %1623 }
 0x421   : > { %v1646_v47 = vsub.f32 %v3730_v61, %v1624_v46 }
 0x423   : > { %v1654_v48 = vmul.f32 1.442695, %v1646_v47 }
 0x425   : > { %3307 = vpow2.f32 %v1654_v48  ;;  %v1633_v49 = vpop.xlane.xlu0 %1632 }
 0x426   : > { %v1649_v50 = vsub.f32 %v1617_v4, %v1633_v49 }
 0x428   : > { %v1627_v51 = vpop.xlane.xlu1 %1626  ;;  %v1660_v53 = vmul.f32 1.442695, %v1649_v50 }
 0x429   : > { %v1647_v52 = vsub.f32 %v1615_v9, %v1627_v51 }
 0x42b   : > { %v1656_v54 = vmul.f32 1.442695, %v1647_v52 }
 0x42c   : > { %v1630_v55 = vpop.xlane.xlu0 %1629 }
 0x42d   : > { %3309 = vpow2.f32 %v1656_v54  ;;  %v1648_v56 = vsub.f32 %v1616_v19, %v1630_v55 }
 0x42e   : > { %3311 = vpow2.f32 %v1660_v53 }
 0x42f   : > { %v3308_v57 = vpop.eup %3307  ;;  %v1658_v58 = vmul.f32 1.442695, %v1648_v56 }
 0x430   : > { %v1636_v59 = vpop.xlane.xlu1 %1635  ;;  %v1639_v60 = vpop.xlane.xlu0 %1638  ;;  %v1670_v62 = vsel %vm930_vm3, %v3308_v57, 0.0 }
 0x431   : > { %3313 = vpow2.f32 %v1658_v58  ;;  %v1650_v61 = vsub.f32 %v1618_v26, %v1636_v59  ;;  %v1651_v63 = vsub.f32 %v1619_v25, %v1639_v60  ;;  %1671 = vadd.xlane.f32.xlu1 %v1670_v62  ;;  %v3299_v62 = vld [vmem:[%s4004_s18] sm:$0xff]  }
 0x433   : > { %v1662_v0 = vmul.f32 1.442695, %v1650_v61  ;;  %v1664_v1 = vmul.f32 1.442695, %v1651_v63 }
 0x435   : > { %3315 = vpow2.f32 %v1662_v0  ;;  %v1642_v2 = vpop.xlane.xlu1 %1641  ;;  %v1645_v3 = vpop.xlane.xlu0 %1644 }
 0x436   : > { %3317 = vpow2.f32 %v1664_v1  ;;  %v1652_v4 = vsub.f32 %v1620_v41, %v1642_v2  ;;  %v1653_v5 = vsub.f32 %v1621_v43, %v1645_v3  ;;  %v3300_v1 = vld [vmem:[%s4004_s18 + $0x8] sm:$0xff]   ;;  %s4007_s18 = scalar_lea.vmem %s3964_s9, %s3561_s23  ;;  %s4009_s23 = sld [smem:[#allocation18_spill]] (!%p3048_p5) }
 0x437   : > { %v3310_v6 = vpop.eup %3309 }
 0x438   : > { %v1666_v7 = vmul.f32 1.442695, %v1652_v4  ;;  %v1668_v8 = vmul.f32 1.442695, %v1653_v5  ;;  %v1673_v9 = vsel %vm930_vm3, %v3310_v6, 0.0  ;;  %v3771_v10 = vpop.eup %3311 }
 0x439   : > { %v1711_v11 = vpop.permute.xlu1 %1710  ;;  %1674 = vadd.xlane.f32.xlu0 %v1673_v9  ;;  %v1787_v12 = vpop.permute.xlu0 %1786  ;;  %v1679_v15 = vsel %vm930_vm3, %v3771_v10, 0.0 }
 0x43a   : > { %3319 = vpow2.f32 %v1666_v7  ;;  %3162 = vmatpush3.msra.mxu1 %v1711_v11  ;;  %3167 = vmatpush3.msra.mxu0 %v1787_v12 }
 0x43b   : > { %v3314_v13 = vpop.eup %3313  ;;  %3321 = vpow2.f32 %v1668_v8  ;;  %3171 = vmatprep.subr.mxu1 %v3423_v31  ;;  %3176 = vmatprep.subr.mxu0 %v3423_v31 }
 0x43c   : > { %v1676_v14 = vsel %vm930_vm3, %v3314_v13, 0.0 }
 0x43d   : > { %1677 = vadd.xlane.f32.xlu1 %v1676_v14  ;;  %1680 = vadd.xlane.f32.xlu0 %v1679_v15  ;;  %v1863_v24 = vpop.permute.xlu1 %1862  ;;  %v2015_v28 = vpop.permute.xlu0 %2014 }
 0x43f   : > { %v3316_v16 = vpop.eup %3315 }
 0x440   : > { %v3318_v17 = vpop.eup %3317  ;;  %v1682_v18 = vsel %vm930_vm3, %v3316_v16, 0.0 }
 0x441   : > { %1683 = vadd.xlane.f32.xlu1 %v1682_v18  ;;  %v1685_v19 = vsel %vm930_vm3, %v3318_v17, 0.0  ;;  %v1939_v25 = vpop.permute.xlu1 %1938 }
 0x442   : > { %1686 = vadd.xlane.f32.xlu0 %v1685_v19 }
 0x444   : > { %v3780_v20 = vpop.eup %3319 }
 0x445   : > { %v3782_v21 = vpop.eup %3321  ;;  %v1688_v22 = vsel %vm930_vm3, %v3780_v20, 0.0  ;;  %v2091_v26 = vpop.permute.xlu1 %2090 }
 0x446   : > { %1689 = vadd.xlane.f32.xlu1 %v1688_v22  ;;  %v1691_v23 = vsel %vm930_vm3, %v3782_v21, 0.0 }
 0x447   : > { %1692 = vadd.xlane.f32.xlu0 %v1691_v23 }
 0x457   : > { %2242 = vrot.lane.b32.xlu1 %v3671_v42, %s3435_s24 }
 0x45d   : > { %2166 = vrot.lane.b32.xlu0 %v3667_v38, %s3435_s24 }
 0x4be   : > { %v1672_v27 = vpop.xlane.xlu1 %1671 }
 0x4bf   : > { %3323 = vrcp.f32 %v1672_v27 }
 0x4c6   : > { %v1675_v29 = vpop.xlane.xlu0 %1674 }
 0x4c7   : > { %3325 = vrcp.f32 %v1675_v29 }
 0x4c9   : > { %v3324_v30 = vpop.eup %3323 }
 0x4ca   : > { %v1702_v32 = vmul.f32 %v3324_v30, %v3308_v57  ;;  %v1678_v35 = vpop.xlane.xlu1 %1677  ;;  %v1681_v36 = vpop.xlane.xlu0 %1680  ;;  %v3030_v30 = vld [vmem:[%s4005_s1] ss:$0 sm:$0xff] }
 0x4cb   : > { %3327 = vrcp.f32 %v1678_v35 }
 0x4cc   : > { %3329 = vrcp.f32 %v1681_v36  ;;  %3164 = vmatmul.mubr.msk.f32.vlgmr.msra.gmra.mrb[8].mxu1 %vm930_vm3, %v1702_v32 }
 0x4cd   : > { %3172 = vmatpush3.msra.mxu1 %v1863_v24  ;;  %3173 = vmatprep.mubr.msk.f32.mxu1 %vm3424_vm1, %v3423_v31 }
 0x4ce   : > { %v1684_v38 = vpop.xlane.xlu1 %1683  ;;  %3181 = vmatprep.subr.mxu1 %v3423_v31 }
 0x4cf   : > { %3331 = vrcp.f32 %v1684_v38  ;;  %v1687_v42 = vpop.xlane.xlu0 %1686 }
 0x4d0   : > { %3333 = vrcp.f32 %v1687_v42 }
 0x4d1   : > { %v3326_v37 = vpop.eup %3325 }
 0x4d2   : > { %v1703_v39 = vmul.f32 %v3326_v37, %v3310_v6 }
 0x4d3   : > { %v1690_v40 = vpop.xlane.xlu1 %1689 }
 0x4d4   : > { %3335 = vrcp.f32 %v1690_v40  ;;  %v1693_v41 = vpop.xlane.xlu0 %1692  ;;  %3169 = vmatmul.mubr.msk.f32.vlgmr.msra.gmra.mrb[12].mxu0 %vm930_vm3, %v1703_v39 }
 0x4d5   : > { %v3328_v43 = vpop.eup %3327  ;;  %3337 = vrcp.f32 %v1693_v41  ;;  %3177 = vmatpush3.msra.mxu0 %v1939_v25  ;;  %3178 = vmatprep.mubr.msk.f32.mxu0 %vm3424_vm1, %v3423_v31 }
 0x4d6   : > { %v3330_v44 = vpop.eup %3329  ;;  %v1704_v45 = vmul.f32 %v3328_v43, %v3314_v13  ;;  %3186 = vmatprep.subr.mxu0 %v3423_v31 }
 0x4d7   : > { %v1705_v46 = vmul.f32 %v3330_v44, %v3771_v10  ;;  %v2243_v52 = vpop.permute.xlu1 %2242 }
 0x4d8   : > { %3174 = vmatmul.mubr.msk.f32.vlgmr.msra.gmra.mrb[10].mxu1 %vm930_vm3, %v1704_v45  ;;  %v2167_v51 = vpop.permute.xlu0 %2166 }
 0x4d9   : > { %v3332_v47 = vpop.eup %3331  ;;  %3179 = vmatmul.mubr.msk.f32.vlgmr.msra.gmra.mrb[14].mxu0 %vm930_vm3, %v1705_v46  ;;  %3182 = vmatpush3.msra.mxu1 %v2015_v28 }
 0x4da   : > { %v3334_v48 = vpop.eup %3333  ;;  %v1706_v49 = vmul.f32 %v3332_v47, %v3316_v16  ;;  %3187 = vmatpush3.msra.mxu0 %v2091_v26  ;;  %3183 = vmatprep.mubr.msk.f32.mxu1 %vm3424_vm1, %v3423_v31 }
 0x4db   : > { %v1707_v50 = vmul.f32 %v3334_v48, %v3318_v17  ;;  %3188 = vmatprep.mubr.msk.f32.mxu0 %vm3424_vm1, %v3423_v31  ;;  %3191 = vmatprep.subr.mxu1 %v3423_v31 }
 0x4dc   : > { %3196 = vmatprep.subr.mxu0 %v3423_v31  ;;  %3184 = vmatmul.mubr.msk.f32.vlgmr.msra.gmra.mrb[12].mxu1 %vm930_vm3, %v1706_v49 }
 0x4dd   : > { %3189 = vmatmul.mubr.msk.f32.vlgmr.msra.gmra.mrb[16].mxu0 %vm930_vm3, %v1707_v50  ;;  %3192 = vmatpush3.msra.mxu1 %v2167_v51 }
 0x4de   : > { %v3336_v53 = vpop.eup %3335  ;;  %3197 = vmatpush3.msra.mxu0 %v2243_v52  ;;  %3193 = vmatprep.mubr.msk.f32.mxu1 %vm3424_vm1, %v3423_v31 }
 0x4df   : > { %v3338_v54 = vpop.eup %3337  ;;  %v1708_v55 = vmul.f32 %v3336_v53, %v3780_v20  ;;  %3198 = vmatprep.mubr.msk.f32.mxu0 %vm3424_vm1, %v3423_v31  ;;  %3201 = vmatprep.subr.bf16.mxu1 %v3423_v31  ;;  %v3302_v53 = vld [vmem:[%s3593_s28 + $0x8] sm:$0xff]  }
 0x4e0   : > { %v1709_v56 = vmul.f32 %v3338_v54, %v3782_v21  ;;  %3209 = vmatprep.subr.bf16.mxu0 %v3423_v31 }
 0x4e1   : > { %3194 = vmatmul.mubr.msk.f32.vlgmr.msra.gmra.mrb[14].mxu1 %vm930_vm3, %v1708_v55 }
 0x4e2   : > { %3199 = vmatmul.mubr.msk.f32.vlgmr.msra.gmra.mrb[18].mxu0 %vm930_vm3, %v1709_v56  ;;  %3205 = vmatprep.mubr.msk.bf16.mxu1 %vm3424_vm1, %v3423_v31 }
 0x4e3   : > { %3213 = vmatprep.mubr.msk.bf16.mxu0 %vm3424_vm1, %v3423_v31  ;;  %3202 = vmatpush3.bf16.msra.mxu1 %v3299_v62  ;;  %v3034_v62 = vld [vmem:[%s4006_s16] ss:$0 sm:$0xff] }
 0x4e4   : > { %3203 = vmatprep.subr.bf16.mxu1 %v3423_v31 }
 0x4e7   : > { %3204 = vmatpush3.bf16.msra.mxu1 %v3300_v1 }
 0x4e8   : > { %3217 = vmatprep.subr.bf16.mxu1 %v3423_v31 }
 0x59f   : > { %v1782_v57 = vpop.f32.mrb[8].mxu1 }
 0x5a0   : > { %v3165_v58 = vpop.f32.mrb[9].mxu1 }
 0x5a7   : > { %v1858_v59 = vpop.f32.mrb[12].mxu0 }
 0x5a8   : > { %v3170_v60 = vpop.f32.mrb[13].mxu0 }
 0x5ab   : > { %v1934_v61 = vpop.f32.mrb[10].mxu1 }
 0x5ac   : > { %v2010_v63 = vpop.f32.mrb[14].mxu0  ;;  %v3175_v0 = vpop.f32.mrb[11].mxu1 }
 0x5ad   : > { %v3282_v2 = vpack.i.bf16 %v2010_v63, %v1934_v61  ;;  %v3180_v3 = vpop.f32.mrb[15].mxu0 }
 0x5af   : > { %3283 = vrot.lane.b32.xlu0 %v3282_v2, %s3436_s25  ;;  %v2086_v4 = vpop.f32.mrb[12].mxu1  ;;  %v3035_v2 = vld [vmem:[%s4007_s18] ss:$0 sm:$0xff]  ;;  %s4010_s18 = sld [smem:[#allocation19_spill]] (!%p3048_p5) }
 0x5b0   : > { %v2162_v5 = vpop.f32.mrb[16].mxu0  ;;  %v3185_v6 = vpop.f32.mrb[13].mxu1 }
 0x5b1   : > { %v3287_v7 = vpack.i.bf16 %v2162_v5, %v2086_v4  ;;  %v3190_v8 = vpop.f32.mrb[17].mxu0 }
 0x5b2   : > { %v3304_v8 = vld [vmem:[%s3603_s20 + $0x8] sm:$0xff]  }
 0x5b3   : > { %3288 = vrot.lane.b32.xlu1 %v3287_v7, %s3437_s27  ;;  %v3303_v7 = vld [vmem:[%s3603_s20] sm:$0xff]  }
 0x5b4   : > { %v2238_v9 = vpop.f32.mrb[14].mxu1 }
 0x5b5   : > { %v2314_v10 = vpop.f32.mrb[18].mxu0  ;;  %v3195_v11 = vpop.f32.mrb[15].mxu1 }
 0x5b6   : > { %v3292_v12 = vpack.i.bf16 %v2314_v10, %v2238_v9  ;;  %v3200_v13 = vpop.f32.mrb[19].mxu0  ;;  %v3305_v9 = vld [vmem:[%s3603_s20 + $0x10] sm:$0xff]   ;;  %v3306_v10 = vld [vmem:[%s3603_s20 + $0x18] sm:$0xff]   ;;  %v3036_v11 = vld [vmem:[%s4008_s30] ss:$0 sm:$0xff] }
 0x5b8   : > { %3293 = vrot.lane.b32.xlu0 %v3292_v12, %s3438_s29 }
 0x621   : > { %v3284_v14 = vpop.permute.xlu0 %3283 }
 0x622   : > { %v3286_v16 = vunpack.i.h.bf16 %v3284_v14  ;;  %v3285_v17 = vunpack.i.l.bf16 %v3284_v14 }
 0x624   : > { %v2343_v21 = vsel %vm930_vm3, %v1858_v59, %v3286_v16  ;;  %v2342_v22 = vsel %vm930_vm3, %v1782_v57, %v3285_v17 }
 0x625   : > { %v3289_v15 = vpop.permute.xlu1 %3288 }
 0x626   : > { %v3291_v18 = vunpack.i.h.bf16 %v3289_v15  ;;  %v3290_v19 = vunpack.i.l.bf16 %v3289_v15 }
 0x628   : > { %v2346_v25 = vsel %vm2344_vm4, %v2343_v21, %v3291_v18  ;;  %v2345_v26 = vsel %vm2344_vm4, %v2342_v22, %v3290_v19 }
 0x62a   : > { %v3294_v20 = vpop.permute.xlu0 %3293 }
 0x62b   : > { %v3296_v23 = vunpack.i.h.bf16 %v3294_v20  ;;  %v3295_v24 = vunpack.i.l.bf16 %v3294_v20 }
 0x62d   : > { %v2349_v27 = vsel %vm2347_vm5, %v2346_v25, %v3296_v23  ;;  %v2348_v28 = vsel %vm2347_vm5, %v2345_v26, %v3295_v24 }
 0x62e   : > { %v2350_v29 = vpack.c.bf16 %v2349_v27, %v2348_v28 }
 0x630   : > { %3206 = vmatmul.mubr.msk.bf16.vlgmr.msra.gmra.mrb[16].mxu1 %vm882_vm2, %v2350_v29 }
 0x631   : > { %3225 = vmatprep.mubr.msk.bf16.mxu1 %vm3424_vm1, %v3423_v31  ;;  %3218 = vmatpush3.bf16.msra.mxu1 %v3303_v7 }
 0x632   : > { %3219 = vmatprep.subr.bf16.mxu1 %v3423_v31 }
 0x635   : > { %3220 = vmatpush3.bf16.msra.mxu1 %v3304_v8 }
 0x636   : > { %3221 = vmatprep.subr.bf16.mxu1 %v3423_v31 }
 0x639   : > { %3222 = vmatpush3.bf16.msra.mxu1 %v3305_v9 }
 0x63a   : > { %3223 = vmatprep.subr.bf16.mxu1 %v3423_v31 }
 0x63d   : > { %3224 = vmatpush3.bf16.msra.mxu1 %v3306_v10  ;;  %v3351_v10 = vld [vmem:[%s4009_s23] sm:$0xff] (!%p3048_p5)  }
 0x703   : > { %v2411_v32 = vpop.f32.mrb[16].mxu1 }
 0x704   : > { %v2412_v35 = vadd.f32 %v3030_v30, %v2411_v32  ;;  %v3207_v36 = vpop.f32.mrb[17].mxu1 }
 0x705   : > { %v2414_v38 = vpop.f32.mrb[18].mxu1 }
 0x706   : > { %v2415_v42 = vadd.f32 %v3030_v30, %v2414_v38  ;;  %v3208_v37 = vpop.f32.mrb[19].mxu1  ;;  %v2418_v39 = vadd.f32 %v2412_v35, %v3649_v33 }
 0x707   : > { %v3040_v37 = vld [vmem:[%s787_s2] ss:$0 sm:$0xff] }
 0x708   : > { %v2422_v40 = vsel %vm882_vm2, %v2418_v39, 0.0  ;;  %v2419_v41 = vadd.f32 %v2415_v42, %v3651_v34  ;;  %v3301_v34 = vld [vmem:[%s3593_s28] sm:$0xff]  }
 0x709   : > { %2423 = vadd.xlane.f32.xlu1 %v2422_v40  ;;  %3210 = vmatpush3.bf16.msra.mxu0 %v3301_v34 }
 0x70a   : > { %v2425_v43 = vsel %vm882_vm2, %v2419_v41, 0.0  ;;  %3211 = vmatprep.subr.bf16.mxu0 %v3423_v31 }
 0x70b   : > { %2426 = vadd.xlane.f32.xlu0 %v2425_v43 }
 0x70d   : > { %3212 = vmatpush3.bf16.msra.mxu0 %v3302_v53 }
 0x796   : > { %v2424_v44 = vpop.xlane.xlu1 %2423 }
 0x797   : > { %v2429_v45 = vmul.f32 0.03125, %v2424_v44 }
 0x798   : > { %v2427_v46 = vpop.xlane.xlu0 %2426 }
 0x799   : > { %v2431_v47 = vsub.f32 %v2418_v39, %v2429_v45  ;;  %v2430_v48 = vmul.f32 0.03125, %v2427_v46 }
 0x79b   : > { %v2432_v49 = vsub.f32 %v2419_v41, %v2430_v48  ;;  %v2433_v50 = vmul.f32 %v2431_v47, %v2431_v47 }
 0x79d   : > { %v2435_v51 = vsel %vm882_vm2, %v2433_v50, 0.0  ;;  %v2434_v33 = vmul.f32 %v2432_v49, %v2432_v49 }
 0x79e   : > { %2436 = vadd.xlane.f32.xlu0 %v2435_v51 }
 0x79f   : > { %v2438_v52 = vsel %vm882_vm2, %v2434_v33, 0.0 }
 0x7a0   : > { %2439 = vadd.xlane.f32.xlu1 %v2438_v52 }
 0x82b   : > { %v2437_v54 = vpop.xlane.xlu0 %2436 }
 0x82c   : > { %v2441_v55 = vmul.f32 0.03125, %v2437_v54 }
 0x82d   : > { %v2440_v56 = vpop.xlane.xlu1 %2439 }
 0x82e   : > { %v2443_v57 = vadd.f32 1e-12, %v2441_v55  ;;  %v2442_v58 = vmul.f32 0.03125, %v2440_v56 }
 0x830   : > { %3339 = vrsqrt.f32 %v2443_v57  ;;  %v2444_v59 = vadd.f32 1e-12, %v2442_v58 }
 0x832   : > { %3341 = vrsqrt.f32 %v2444_v59 }
 0x83a   : > { %v3340_v60 = vpop.eup %3339 }
 0x83b   : > { %v2447_v61 = vmul.f32 %v3340_v60, %v2431_v47 }
 0x83c   : > { %v3342_v63 = vpop.eup %3341 }
 0x83d   : > { %v2455_v0 = vmul.f32 %v3034_v62, %v2447_v61  ;;  %v2448_v1 = vmul.f32 %v3342_v63, %v2432_v49 }
 0x83f   : > { %v2456_v3 = vmul.f32 %v3034_v62, %v2448_v1  ;;  %v2463_v4 = vadd.f32 %v3035_v2, %v2455_v0  ;;  %v3046_v1 = vld [vmem:[%s790_s26] ss:$0 sm:$0xff] }
 0x841   : > { %v2464_v5 = vadd.f32 %v3035_v2, %v2456_v3 }
 0x843   : > { %v2465_v6 = vpack.c.bf16 %v2464_v5, %v2463_v4 }
 0x845   : > { %3214 = vmatmul.mubr.msk.bf16.vlgmr.msra.gmra.mrb[20].mxu0 %vm882_vm2, %v2465_v6 }
 0x918   : > { %v2526_v12 = vpop.f32.mrb[20].mxu0 }
 0x919   : > { %v2527_v13 = vadd.f32 %v3036_v11, %v2526_v12  ;;  %v3215_v14 = vpop.f32.mrb[21].mxu0  ;;  %v3352_v12 = vld [vmem:[%s4009_s23 + $0x8] sm:$0xff] (!%p3048_p5)  }
 0x91a   : > { %v2529_v15 = vpop.f32.mrb[22].mxu0 }
 0x91b   : > { %v2535_v16 = vmul.f32 0.044715, %v2527_v13  ;;  %v2530_v17 = vadd.f32 %v3036_v11, %v2529_v15  ;;  %v3216_v18 = vpop.f32.mrb[23].mxu0  ;;  %v2533_v30 = vmul.f32 0.5, %v2527_v13  ;;  %v3439_v11 = vmov (!%p3048_p5), 0.0  }
 0x91c   : > { %3229 = vmatprep.subr.bf16.mxu0 (!%p3048_p5), %v3439_v11  ;;  %3233 = vmatprep.mubr.msk.bf16.mxu0 (!%p3048_p5), %vm3440_vm7, %v3439_v11 }
 0x91d   : > { %v2537_v19 = vmul.f32 %v2535_v16, %v2527_v13  ;;  %v2536_v20 = vmul.f32 0.044715, %v2530_v17  ;;  %v2534_v32 = vmul.f32 0.5, %v2530_v17  ;;  %3230 = vmatpush3.bf16.msra.mxu0 (!%p3048_p5), %v3351_v10  ;;  %v3049_v16 = vld [vmem:[%s4010_s18] ss:$0 sm:$0xff] (!%p3048_p5) }
 0x91e   : > { %3231 = vmatprep.subr.bf16.mxu0 (!%p3048_p5), %v3439_v11 }
 0x91f   : > { %v2539_v21 = vmul.f32 %v2537_v19, %v2527_v13  ;;  %v2538_v22 = vmul.f32 %v2536_v20, %v2530_v17 }
 0x921   : > { %v2541_v23 = vadd.f32 %v2539_v21, %v2527_v13  ;;  %v2540_v24 = vmul.f32 %v2538_v22, %v2530_v17  ;;  %3232 = vmatpush3.bf16.msra.mxu0 (!%p3048_p5), %v3352_v12 }
 0x923   : > { %v2543_v31 = vmul.f32 0.7978846, %v2541_v23  ;;  %v2542_v25 = vadd.f32 %v2540_v24, %v2530_v17 }
 0x925   : > { %3343 = vtanh.f32 %v2543_v31  ;;  %v2544_v26 = vmul.f32 0.7978846, %v2542_v25 }
 0x927   : > { %3345 = vtanh.f32 %v2544_v26 }
 0x92f   : > { %v3344_v27 = vpop.eup %3343 }
 0x930   : > { %v2547_v28 = vadd.f32 1.0, %v3344_v27 }
 0x931   : > { %v3346_v29 = vpop.eup %3345 }
 0x932   : > { %v2548_v35 = vadd.f32 1.0, %v3346_v29  ;;  %v2549_v36 = vmul.f32 %v2547_v28, %v2533_v30 }
 0x934   : > { %v2550_v38 = vmul.f32 %v2548_v35, %v2534_v32 }
 0x936   : > { %v2551_v42 = vpack.c.bf16 %v2550_v38, %v2549_v36 }
 0x938   : > { %3226 = vmatmul.mubr.msk.bf16.vlgmr.msra.gmra.mrb[20].mxu1 %vm2591_vm6, %v2551_v42 }
 0xa0b   : > { %v2629_v39 = vpop.f32.mrb[20].mxu1 }
 0xa0c   : > { %v2630_v40 = vadd.f32 %v3040_v37, %v2629_v39  ;;  %v3227_v41 = vpop.f32.mrb[21].mxu1 }
 0xa0d   : > { %v2632_v43 = vpop.f32.mrb[22].mxu1 }
 0xa0e   : > { %v2633_v44 = vadd.f32 %v3040_v37, %v2632_v43  ;;  %v3228_v45 = vpop.f32.mrb[23].mxu1  ;;  %v2636_v46 = vadd.f32 %v2630_v40, %v2463_v4  ;;  %v3047_v4 = vld [vmem:[%s793_s10] ss:$0 sm:$0xff] }
 0xa10   : > { %v2640_v47 = vsel %vm882_vm2, %v2636_v46, 0.0  ;;  %v2637_v48 = vadd.f32 %v2633_v44, %v2464_v5 }
 0xa11   : > { %2641 = vadd.xlane.f32.xlu0 %v2640_v47 }
 0xa12   : > { %v2643_v49 = vsel %vm882_vm2, %v2637_v48, 0.0 }
 0xa13   : > { %2644 = vadd.xlane.f32.xlu1 %v2643_v49 }
 0xa9e   : > { %v2642_v50 = vpop.xlane.xlu0 %2641 }
 0xa9f   : > { %v2646_v51 = vmul.f32 0.03125, %v2642_v50 }
 0xaa0   : > { %v2645_v33 = vpop.xlane.xlu1 %2644 }
 0xaa1   : > { %v2648_v52 = vsub.f32 %v2636_v46, %v2646_v51  ;;  %v2647_v34 = vmul.f32 0.03125, %v2645_v33 }
 0xaa3   : > { %v2649_v53 = vsub.f32 %v2637_v48, %v2647_v34  ;;  %v2650_v54 = vmul.f32 %v2648_v52, %v2648_v52 }
 0xaa5   : > { %v2652_v55 = vsel %vm882_vm2, %v2650_v54, 0.0  ;;  %v2651_v56 = vmul.f32 %v2649_v53, %v2649_v53 }
 0xaa6   : > { %2653 = vadd.xlane.f32.xlu0 %v2652_v55 }
 0xaa7   : > { %v2655_v57 = vsel %vm882_vm2, %v2651_v56, 0.0 }
 0xaa8   : > { %2656 = vadd.xlane.f32.xlu1 %v2655_v57 }
 0xb33   : > { %v2654_v58 = vpop.xlane.xlu0 %2653 }
 0xb34   : > { %v2658_v59 = vmul.f32 0.03125, %v2654_v58 }
 0xb35   : > { %v2657_v60 = vpop.xlane.xlu1 %2656 }
 0xb36   : > { %v2660_v62 = vadd.f32 1e-12, %v2658_v59  ;;  %v2659_v61 = vmul.f32 0.03125, %v2657_v60 }
 0xb38   : > { %3347 = vrsqrt.f32 %v2660_v62  ;;  %v2661_v63 = vadd.f32 1e-12, %v2659_v61 }
 0xb3a   : > { %3349 = vrsqrt.f32 %v2661_v63 }
 0xb42   : > { %v3348_v0 = vpop.eup %3347 }
 0xb43   : > { %v2664_v2 = vmul.f32 %v3348_v0, %v2648_v52 }
 0xb44   : > { %v3350_v3 = vpop.eup %3349 }
 0xb45   : > { %v2672_v5 = vmul.f32 %v3046_v1, %v2664_v2  ;;  %v2665_v6 = vmul.f32 %v3350_v3, %v2649_v53  ;;  %2689 = sbr.rel (%p3048_p5) target bundleno = 3122 (0xc32), region = 100 }
 0xb47   : > { %v2680_v7 = vadd.f32 %v3047_v4, %v2672_v5  ;;  %v2673_v8 = vmul.f32 %v3046_v1, %v2665_v6 }
 0xb49   : > { %2682 = vst.msk [vmem:[#allocation2] sm:$0xff] %vm882_vm2, %v2680_v7  ;;  %2684 = vst.msk [vmem:[%s3620_s6] sm:$0xff] %vm882_vm2, %v2680_v7  ;;  %v2681_v9 = vadd.f32 %v3047_v4, %v2673_v8 }
 0xb4b   : > { %2683 = vst.msk [vmem:[#allocation2 + $0x8] sm:$0xff] %vm882_vm2, %v2681_v9  ;;  %2685 = vst.msk [vmem:[%s3620_s6 + $0x8] sm:$0xff] %vm882_vm2, %v2681_v9  ;;  %v2691_v13 = vrot.slane (!%p3048_p5), %v2681_v9, 7 }
 0xb4d   : > { %v2694_v14 = vsel %vm2693_vm8, %v2680_v7, %v2691_v13 }
 0xb4e   : > { %v2695_v15 = vpack.c.bf16 %v2694_v14, %v2694_v14 }
 0xb50   : > { %3234 = vmatmul.mubr.msk.bf16.vlgmr.msra.gmra.mrb[0].mxu0 %vm882_vm2, %v2695_v15 }
 0xc23   : > { %v2756_v17 = vpop.f32.mrb[0].mxu0 }
 0xc24   : > { %v2757_v18 = vadd.f32 %v3049_v16, %v2756_v17  ;;  %v3235_v19 = vpop.f32.mrb[1].mxu0 }
 0xc25   : > { %v2759_v20 = vpop.f32.mrb[2].mxu0 }
 0xc26   : > { %3353 = vtanh.f32 %v2757_v18  ;;  %v3236_v21 = vpop.f32.mrb[3].mxu0 }
 0xc30   : > { %v3354_v22 = vpop.eup %3353 }
 0xc31   : > { %2764 = vst.msk [vmem:[#allocation5] sm:$0x3] %vm2763_vm9, %v3354_v22 }
 0xc32 PF: > { %p3245_p6 = scmp.eq.s32.totalorder %s3555_s22, 1  ;;  %s3441_s27 = smov [#allocation3]  }
 0xc33   : > { %s2776_s29 = sshll.u32 %s3441_s27, 4  ;;  %s2777_s29 = int_to_ptr.vmem [resolvable:$true] %s2776_s29 }
 0xc34   : > { %s3355_s30 = scalar_lea.vmem %s2777_s29, 256  ;;  %p3362_p10 = scmp.lt.s32.totalorder %s2777_s29, %s2777_s29 }
 0xc35   : > { %p3356_p7 = scmp.ne.s32.totalorder %s2777_s29, %s3355_s30  ;;  %p3363_p11 = scmp.lt.s32.totalorder %s3355_s30, %s3355_s30 }
 0xc37   : > { %p3357_p8 = pnand %p3356_p7, %p3245_p6  ;;  %p3364_p12 = por %p3363_p11, %p3362_p10 }
 0xc39   : > { %p3358_p9 = pneg %p3357_p8 }
 0xc3b   : > { %p3365_p13 = pnand %p3364_p12, %p3358_p9 }
 0xc3d   : > { %3368 = shalt.err (!%p3365_p13)
}
 0xc3e   : > { %s4011_s2 = sld [smem:[#allocation20_spill]] }
 0xc44   : > { %s3369_s1 = scalar_lea.hbm %s4011_s2, 256 }
 0xc45   : > { %p3370_p0 = scmp.ne.s32.totalorder %s4011_s2, %s3369_s1  ;;  %p3375_p3 = scmp.lt.u32.totalorder %s3369_s1, %s4011_s2 }
 0xc47   : > { %p3371_p1 = pnand %p3370_p0, %p3245_p6 }
 0xc49   : > { %p3372_p2 = pneg %p3371_p1 }
 0xc4b   : > { %p3377_p4 = pnand %p3375_p3, %p3372_p2 }
 0xc4d   : > { %3380 = shalt.err (!%p3377_p4)
}
 0xc4e   : > { %s3442_s10 = smov 128   ;;  %s3443_s24 = smov [#allocation5]  }
 0xc4f   : > { %3238 = dma.vmem_to_hbm [thread:$0]  (%p3245_p6), %s2777_s29, 256, %s4011_s2, [#allocation4], %s3442_s10, %s3442_s10, %s3436_s25  }
 0xc50   : > { %s2793_s18 = sshll.u32 %s3443_s24, 4  ;;  %s2794_s18 = int_to_ptr.vmem [resolvable:$true] %s2793_s18 }
 0xc51   : > { %s3381_s27 = scalar_lea.vmem %s2794_s18, 32  ;;  %p3388_p9 = scmp.lt.s32.totalorder %s2794_s18, %s2794_s18 }
 0xc52   : > { %p3382_p5 = scmp.ne.s32.totalorder %s2794_s18, %s3381_s27  ;;  %p3389_p10 = scmp.lt.s32.totalorder %s3381_s27, %s3381_s27 }
 0xc54   : > { %p3383_p7 = pnand %p3382_p5, %p3245_p6  ;;  %p3390_p11 = por %p3389_p10, %p3388_p9 }
 0xc56   : > { %p3384_p8 = pneg %p3383_p7 }
 0xc58   : > { %p3391_p12 = pnand %p3390_p11, %p3384_p8 }
 0xc5a   : > { %3394 = shalt.err (!%p3391_p12)
}
 0xc5b   : > { %s4012_s0 = sld [smem:[#allocation21_spill]] }
 0xc61   : > { %s3395_s1 = scalar_lea.hbm %s4012_s0, 32 }
 0xc62   : > { %p3396_p13 = scmp.ne.s32.totalorder %s4012_s0, %s3395_s1  ;;  %p3401_p2 = scmp.lt.u32.totalorder %s3395_s1, %s4012_s0 }
 0xc64   : > { %p3397_p0 = pnand %p3396_p13, %p3245_p6 }
 0xc66   : > { %p3398_p1 = pneg %p3397_p0 }
 0xc68   : > { %p3403_p3 = pnand %p3401_p2, %p3398_p1 }
 0xc6a   : > { %3406 = shalt.err (!%p3403_p3)
}
 0xc6b   : > { %3240 = dma.vmem_to_hbm [thread:$0]  (%p3245_p6), %s2794_s18, 32, %s4012_s0, [#allocation6]  }
 0xc6c   : > { %3412 = dma.done.wait (%p3245_p6), [#allocation4], 256  }
 0xc6d   : > { %3414 = vsyncadd (%p3245_p6), [#allocation4], 4294967040 }
 0xc6e   : > { %3416 = dma.done.wait (%p3245_p6), [#allocation6], 32  }
 0xc6f   : > { %3418 = vsyncadd (%p3245_p6), [#allocation6], 4294967264 }
 0xc70 PF: > { %s4013_s10 = sld [smem:[#allocation9_spill]] }
 0xc76   : > { %s33_s1 = sadd.s32 1, %s4013_s10  }
 0xc77   : > { %p30_p4 = scmp.ge.s32.totalorder %s33_s1, 4  }
 0xc79   :  { %32 = sbr.rel (!%p30_p4) target bundleno = 14 (0xe), region = 180 }
 0xc80   :  { %2818 = vsyncpa [#allocation4], 1 }
 0xc81   :  { %2820 = vsyncpa [#allocation4 + $0x1], 1 }
 0xc82   :  { %2821 = vsyncpa [#allocation6], 1 }

</bundles_post_ra>
